<compile_context>
chip_gen: v5e
topology: v5e:2x2
jax: 0.10.0
libtpu: 0.0.40
codegen_flags: <defaults>
</compile_context>

<pallas_src>
import functools
import math

import jax
import jax.numpy as jnp
from jax import lax
from jax.experimental import pallas as pl
from jax.experimental.pallas import tpu as pltpu


def _vmem_limit_bytes():
    """~3/4 of physical VMEM: ~96 MiB on v5e/v6e (128 MiB), ~48 MiB on v7x (64 MiB)."""
    try:
        cap = pltpu.get_tpu_info().vmem_capacity_bytes
    except Exception:
        cap = 64 * 1024 * 1024
    return max(32 * 1024 * 1024, min(int(cap) * 3 // 4, 100 * 1024 * 1024))


_VMEM_LIMIT = _vmem_limit_bytes()


def _pick_tile(n, target, mult=8):
    """Largest tile <= target that divides n and is a multiple of `mult` (else n)."""
    if n <= target:
        return n
    t = (target // mult) * mult
    while t >= mult:
        if n % t == 0:
            return t
        t -= mult
    return n


def _const_spec(shape, single_buffer):
    """BlockSpec for a grid-invariant operand (same block every grid step)."""
    idx = lambda *args: (0,) * len(shape)
    if single_buffer:
        return pl.BlockSpec(shape, idx, pipeline_mode=pl.Buffered(1))
    return pl.BlockSpec(shape, idx)


def _call_pallas(build, *inputs):
    """build(single_buffer: bool) -> pallas_call callable.

    Tries single-buffered (pl.Buffered(1)) specs for grid-invariant operands first
    (halves their VMEM residency); falls back to default double-buffering if the
    installed jax/Mosaic rejects that pipeline mode."""
    try:
        return build(True)(*inputs)
    except Exception:
        return build(False)(*inputs)


def _ln_rows(x, a, b, eps):
    """Annotated-transformer LayerNorm: unbiased std, divide by (std + eps)."""
    x = x.astype(jnp.float32)
    d = x.shape[-1]
    mean = jnp.mean(x, axis=-1, keepdims=True)
    xc = x - mean
    var_unb = jnp.sum(xc * xc, axis=-1, keepdims=True) * (1.0 / (d - 1))
    inv = pl.reciprocal(jnp.sqrt(var_unb) + eps)       # exact reciprocal (EUP slot)
    return a * (xc * inv) + b


# ----------------------------------------------------------------------------
# K/V projection kernel (used only when the query dimension is tiled, nq > 1):
#   kv = [ LN?(src) @ Wk + bk , LN?(src) @ Wv + bv ]   projected once per layer.
# ----------------------------------------------------------------------------
def _kv_proj_kernel(src_ref, a_ref, b_ref, wkv_ref, bkv_ref, o_ref, *, eps, apply_ln):
    src = src_ref[0]                                   # [tk, D]
    if apply_ln:                                       # self-attention kv stream is LN(x)
        src = _ln_rows(src, a_ref[...], b_ref[...], eps)
    kv = (jnp.dot(src.astype(wkv_ref.dtype), wkv_ref[...],
                  preferred_element_type=jnp.float32) + bkv_ref[...])
    o_ref[0] = kv.astype(o_ref.dtype)


def kv_projection(src, ln_a, ln_b, wkv, bkv, apply_ln, row_tile=512, eps=1e-6):
    B, Tk, D = src.shape
    D2 = wkv.shape[1]
    mult = 16 if jnp.dtype(wkv.dtype).itemsize == 2 else 8
    tk = _pick_tile(Tk, row_tile, mult)

    def build(sb):
        return pl.pallas_call(
            functools.partial(_kv_proj_kernel, eps=eps, apply_ln=apply_ln),
            out_shape=jax.ShapeDtypeStruct((B, Tk, D2), wkv.dtype),
            grid=(B, Tk // tk),
            in_specs=[pl.BlockSpec((1, tk, D), lambda bi, ti: (bi, ti, 0)),
                      _const_spec((1, D), sb), _const_spec((1, D), sb),
                      _const_spec((D, D2), sb), _const_spec((1, D2), sb)],
            out_specs=pl.BlockSpec((1, tk, D2), lambda bi, ti: (bi, ti, 0)),
            compiler_params=pltpu.CompilerParams(
                dimension_semantics=("parallel", "parallel"),
                vmem_limit_bytes=_VMEM_LIMIT),
        )

    return _call_pallas(build, src, ln_a, ln_b, wkv, bkv)


# ----------------------------------------------------------------------------
# Fused attention sublayer kernel:
#   out = x + Wo( MHA( LN(x), kv, kv, mask ) ) + bo        (residual included)
# kv_mode: "fused"       -> self-attn, single query tile, fused [D,3D] QKV matmul
#          "inline"      -> src-attn, single query tile, fused [D,2D] K/V matmul
#          "precomputed" -> K/V already projected by kv_projection(); only Q here
# ----------------------------------------------------------------------------
def _attn_kernel(*args, n_heads, kv_mode, eps):
    if kv_mode == "fused":
        (x_ref, m_ref, a_ref, b_ref,
         wqkv_ref, bqkv_ref, wo_ref, bo_ref, o_ref, ctx_ref) = args
    elif kv_mode == "inline":
        (x_ref, kv_ref, m_ref, a_ref, b_ref,
         wq_ref, bq_ref, wkv_ref, bkv_ref, wo_ref, bo_ref, o_ref, ctx_ref) = args
    else:  # "precomputed"
        (x_ref, kv_ref, m_ref, a_ref, b_ref,
         wq_ref, bq_ref, wo_ref, bo_ref, o_ref, ctx_ref) = args

    x = x_ref[0]                                   # [tq, D] f32 residual / query input
    d_model = x.shape[-1]
    dk = d_model // n_heads
    scale = 1.0 / math.sqrt(dk)
    mdt = wo_ref.dtype                             # MXU operand dtype (bf16 or f32)

    nx = _ln_rows(x, a_ref[...], b_ref[...], eps).astype(mdt)   # pre-LN, cast once

    if kv_mode == "fused":
        qkv = (jnp.dot(nx, wqkv_ref[...], preferred_element_type=jnp.float32)
               + bqkv_ref[...])                    # [tq, 3D] f32
        q = (qkv[:, :d_model] * scale).astype(mdt)   # fold 1/sqrt(dk) into q
        k = qkv[:, d_model:2 * d_model].astype(mdt)
        v = qkv[:, 2 * d_model:].astype(mdt)
    else:
        q = ((jnp.dot(nx, wq_ref[...], preferred_element_type=jnp.float32)
              + bq_ref[...]) * scale).astype(mdt)
        if kv_mode == "inline":                    # src-attn: kv stream is raw memory
            kv_src = kv_ref[0].astype(mdt)         # [Tk, D]
            kvp = (jnp.dot(kv_src, wkv_ref[...], preferred_element_type=jnp.float32)
                   + bkv_ref[...])                 # [Tk, 2D] f32
            k = kvp[:, :d_model].astype(mdt)
            v = kvp[:, d_model:].astype(mdt)
        else:                                      # projected once by kv_projection()
            kvp = kv_ref[0]                        # [Tk, 2D] already in mdt
            k = kvp[:, :d_model]
            v = kvp[:, d_model:]

    mask_b = m_ref[0] > 0.0                        # [Mq, Tk], hoisted out of head loop

    # Heads statically unrolled; transpose-free score contraction; per-head context
    # written straight into a VMEM scratch slab (no concatenate).
    for h in range(n_heads):
        sl = slice(h * dk, (h + 1) * dk)
        s = lax.dot_general(q[:, sl], k[:, sl], (((1,), (1,)), ((), ())),
                            preferred_element_type=jnp.float32)          # [tq, Tk]
        s = jnp.where(mask_b, s, -1e9)             # masked_fill semantics
        s = s - jnp.max(s, axis=-1, keepdims=True)
        p = jnp.exp(s)
        p = p * pl.reciprocal(jnp.sum(p, axis=-1, keepdims=True))        # exact recip
        ctx_ref[:, sl] = jnp.dot(p.astype(mdt), v[:, sl],
                                 preferred_element_type=jnp.float32)

    out = (x + jnp.dot(ctx_ref[...].astype(mdt), wo_ref[...],
                       preferred_element_type=jnp.float32) + bo_ref[...])
    o_ref[0] = out.astype(o_ref.dtype)


def attention_sublayer(x, kv, mask, ln_a, ln_b, ap, n_heads, self_attn,
                       q_tile=256, kv_row_tile=512, eps=1e-6):
    B, T, D = x.shape
    Tk = kv.shape[1]
    Mq = mask.shape[1]
    tq = _pick_tile(T, q_tile)
    nq = T // tq

    if self_attn and nq == 1:
        kv_mode = "fused"
    elif nq == 1:
        kv_mode = "inline"
    else:
        kv_mode = "precomputed"
        # Project K/V exactly once per layer (LN on the kv stream only for self-attn);
        # every query tile below reuses this [B, Tk, 2D] slab.
        kv = kv_projection(kv, ln_a, ln_b, ap["wkv"], ap["bkv"],
                           apply_ln=self_attn, row_tile=kv_row_tile, eps=eps)

    kernel = functools.partial(_attn_kernel, n_heads=n_heads, kv_mode=kv_mode, eps=eps)
    mdt = ap["wo"].dtype

    x_spec = pl.BlockSpec((1, tq, D), lambda bi, qi: (bi, qi, 0))
    if Mq == 1:
        m_spec = pl.BlockSpec((1, 1, Tk), lambda bi, qi: (bi, 0, 0))
    else:
        m_spec = pl.BlockSpec((1, tq, Tk), lambda bi, qi: (bi, qi, 0))

    def build(sb):
        vec_d = _const_spec((1, D), sb)
        in_specs = [x_spec]
        if kv_mode != "fused":
            in_specs.append(pl.BlockSpec((1,) + kv.shape[1:], lambda bi, qi: (bi, 0, 0)))
        in_specs += [m_spec, vec_d, vec_d]
        if kv_mode == "fused":
            in_specs += [_const_spec((D, 3 * D), sb), _const_spec((1, 3 * D), sb)]
        elif kv_mode == "inline":
            in_specs += [_const_spec((D, D), sb), vec_d,
                         _const_spec((D, 2 * D), sb), _const_spec((1, 2 * D), sb)]
        else:
            in_specs += [_const_spec((D, D), sb), vec_d]
        in_specs += [_const_spec((D, D), sb), vec_d]

        proj_flops = 2 * B * T * D * (4 * D if kv_mode == "fused" else 2 * D)
        if kv_mode == "inline":
            proj_flops += 4 * B * Tk * D * D
        kv_bytes = 0
        if kv_mode == "inline":
            kv_bytes = 4 * B * Tk * D
        elif kv_mode == "precomputed":
            kv_bytes = jnp.dtype(mdt).itemsize * B * Tk * 2 * D

        return pl.pallas_call(
            kernel,
            out_shape=jax.ShapeDtypeStruct((B, T, D), x.dtype),
            grid=(B, nq),
            in_specs=in_specs,
            out_specs=pl.BlockSpec((1, tq, D), lambda bi, qi: (bi, qi, 0)),
            scratch_shapes=[pltpu.VMEM((tq, D), jnp.float32)],
            compiler_params=pltpu.CompilerParams(
                dimension_semantics=("parallel", "parallel"),
                vmem_limit_bytes=_VMEM_LIMIT),
            cost_estimate=pl.CostEstimate(
                flops=int(proj_flops + 4 * B * T * Tk * D),
                transcendentals=int(B * n_heads * T * Tk),
                bytes_accessed=int(8 * B * T * D + kv_bytes + 4 * B * Mq * Tk
                                   + jnp.dtype(mdt).itemsize * 4 * D * D)),
        )

    inputs = [x]
    if kv_mode != "fused":
        inputs.append(kv)
    inputs += [mask, ln_a, ln_b]
    if kv_mode == "fused":
        inputs += [ap["wqkv"], ap["bqkv"]]
    elif kv_mode == "inline":
        inputs += [ap["wq"], ap["bq"], ap["wkv"], ap["bkv"]]
    else:
        inputs += [ap["wq"], ap["bq"]]
    inputs += [ap["wo"], ap["bo"]]

    return _call_pallas(build, *inputs)


# ----------------------------------------------------------------------------
# Fused FFN sublayer kernel (d_ff chunked reduction axis):
#   out = x + W2( relu( W1(LN(x)) + b1 ) ) + b2   [+ final LayerNorm on last layer]
# ----------------------------------------------------------------------------
def _ffn_kernel(*args, eps, final_norm):
    if final_norm:
        (x_ref, a_ref, b_ref, w1_ref, b1_ref, w2_ref, b2_ref,
         fa_ref, fb_ref, o_ref, nx_ref, acc_ref) = args
    else:
        (x_ref, a_ref, b_ref, w1_ref, b1_ref, w2_ref, b2_ref,
         o_ref, nx_ref, acc_ref) = args
        fa_ref = fb_ref = None

    c = pl.program_id(1)

    @pl.when(c == 0)
    def _():
        nx_ref[...] = _ln_rows(x_ref[...], a_ref[...], b_ref[...], eps).astype(nx_ref.dtype)
        acc_ref[...] = jnp.zeros_like(acc_ref)

    h = (jnp.dot(nx_ref[...], w1_ref[...], preferred_element_type=jnp.float32)
         + b1_ref[...])
    h = jnp.maximum(h, 0.0)
    acc_ref[...] += jnp.dot(h.astype(w2_ref.dtype), w2_ref[...],
                            preferred_element_type=jnp.float32)

    @pl.when(c == pl.num_programs(1) - 1)
    def _():
        out = x_ref[...] + acc_ref[...] + b2_ref[...]
        if final_norm:                             # decoder's trailing LayerNorm, fused
            out = _ln_rows(out, fa_ref[...], fb_ref[...], eps)
        o_ref[...] = out.astype(o_ref.dtype)


def ffn_sublayer(x, ln_a, ln_b, fp, final_ln=None, row_tile=512, dff_tile=1024, eps=1e-6):
    B, T, D = x.shape
    w1, b1, w2, b2 = fp["w1"], fp["b1"], fp["w2"], fp["b2"]
    dff = w1.shape[1]
    n = B * T
    rt = _pick_tile(n, row_tile)
    dc = _pick_tile(dff, dff_tile, mult=128)       # d_ff chunk (lane-aligned)
    nc = dff // dc
    mdt = w1.dtype
    final_norm = final_ln is not None
    kernel = functools.partial(_ffn_kernel, eps=eps, final_norm=final_norm)

    def build(sb):
        in_specs = [
            pl.BlockSpec((rt, D), lambda i, c: (i, 0)),
            _const_spec((1, D), sb), _const_spec((1, D), sb),
            pl.BlockSpec((D, dc), lambda i, c: (0, c)),
            pl.BlockSpec((1, dc), lambda i, c: (0, c)),
            pl.BlockSpec((dc, D), lambda i, c: (c, 0)),
            _const_spec((1, D), sb),
        ]
        if final_norm:
            in_specs += [_const_spec((1, D), sb), _const_spec((1, D), sb)]
        return pl.pallas_call(
            kernel,
            out_shape=jax.ShapeDtypeStruct((n, D), x.dtype),
            grid=(n // rt, nc),
            in_specs=in_specs,
            out_specs=pl.BlockSpec((rt, D), lambda i, c: (i, 0)),
            scratch_shapes=[pltpu.VMEM((rt, D), mdt),            # LN(x) stash (MXU dtype)
                            pltpu.VMEM((rt, D), jnp.float32)],   # f32 accumulator
            compiler_params=pltpu.CompilerParams(
                dimension_semantics=("parallel", "arbitrary"),
                vmem_limit_bytes=_VMEM_LIMIT),
            cost_estimate=pl.CostEstimate(
                flops=int(4 * n * D * dff), transcendentals=0,
                bytes_accessed=int(8 * n * D
                                   + jnp.dtype(mdt).itemsize * 2 * D * dff)),
        )

    inputs = [x.reshape(n, D), ln_a, ln_b, w1, b1, w2, b2]
    if final_norm:
        inputs += [final_ln[0], final_ln[1]]
    out = _call_pallas(build, *inputs)
    return out.reshape(B, T, D)


# ----------------------------------------------------------------------------
# Decoder assembly — three fused pallas_calls per layer (+ one kv_projection per
# attention sublayer when the query axis is tiled); final LN fused into last FFN.
# ----------------------------------------------------------------------------
def decoder_layer(x, memory, src_mask, tgt_mask, p, n_heads, q_tile, final_ln=None):
    x = attention_sublayer(x, x, tgt_mask, p["ln0_a"], p["ln0_b"], p["self_attn"],
                           n_heads, self_attn=True, q_tile=q_tile)
    x = attention_sublayer(x, memory, src_mask, p["ln1_a"], p["ln1_b"], p["src_attn"],
                           n_heads, self_attn=False, q_tile=q_tile)
    x = ffn_sublayer(x, p["ln2_a"], p["ln2_b"], p["ffn"], final_ln=final_ln)
    return x


def decoder(x, memory, src_mask, tgt_mask, kparams, n_heads, q_tile=256):
    layers = kparams["layers"]
    last = len(layers) - 1
    for i, p in enumerate(layers):
        fin = (kparams["norm_a"], kparams["norm_b"]) if i == last else None
        x = decoder_layer(x, memory, src_mask, tgt_mask, p, n_heads, q_tile, final_ln=fin)
    return x


# ----------------------------------------------------------------------------
# Parameter preparation: fuse QKV / KV weights once, cast MXU operands to bf16,
# reshape biases / LN vectors to (1, D) rows.  Done once, outside the hot path.
# ----------------------------------------------------------------------------
def prepare_params(raw, matmul_dtype=jnp.bfloat16):
    def prep_attn(t, with_fused):
        wq, bq, wk, bk, wv, bv, wo, bo = t
        D = wq.shape[0]
        d = dict(
            wq=wq.astype(matmul_dtype), bq=bq.reshape(1, D).astype(jnp.float32),
            wkv=jnp.concatenate([wk, wv], axis=1).astype(matmul_dtype),
            bkv=jnp.concatenate([bk, bv]).reshape(1, 2 * D).astype(jnp.float32),
            wo=wo.astype(matmul_dtype), bo=bo.reshape(1, D).astype(jnp.float32),
        )
        if with_fused:
            d["wqkv"] = jnp.concatenate([wq, wk, wv], axis=1).astype(matmul_dtype)
            d["bqkv"] = jnp.concatenate([bq, bk, bv]).reshape(1, 3 * D).astype(jnp.float32)
        return d

    layers = []
    for p in raw["layers"]:
        D = p["ln0_a"].shape[0]
        w1, b1, w2, b2 = p["ffn"]
        dff = w1.shape[1]
        layers.append(dict(
            ln0_a=p["ln0_a"].reshape(1, D), ln0_b=p["ln0_b"].reshape(1, D),
            ln1_a=p["ln1_a"].reshape(1, D), ln1_b=p["ln1_b"].reshape(1, D),
            ln2_a=p["ln2_a"].reshape(1, D), ln2_b=p["ln2_b"].reshape(1, D),
            self_attn=prep_attn(p["self_attn"], with_fused=True),
            src_attn=prep_attn(p["src_attn"], with_fused=False),
            ffn=dict(w1=w1.astype(matmul_dtype), b1=b1.reshape(1, dff),
                     w2=w2.astype(matmul_dtype), b2=b2.reshape(1, D)),
        ))
    D = raw["norm_a"].shape[0]
    return dict(layers=layers,
                norm_a=raw["norm_a"].reshape(1, D), norm_b=raw["norm_b"].reshape(1, D))


# ----------------------------------------------------------------------------
# Deterministic parameter init (nn.Linear-style uniform, nn.Parameter ones/zeros)
# ----------------------------------------------------------------------------
def _linear_init(key, din, dout):
    k1, k2 = jax.random.split(key)
    lim = 1.0 / math.sqrt(din)
    w = jax.random.uniform(k1, (din, dout), jnp.float32, -lim, lim)
    b = jax.random.uniform(k2, (dout,), jnp.float32, -lim, lim)
    return w, b


def init_params(key, n_layers, d_model, d_ff):
    layers = []
    keys = jax.random.split(key, n_layers)
    for lk in keys:
        ks = jax.random.split(lk, 10)
        wq, bq = _linear_init(ks[0], d_model, d_model)
        wk, bk = _linear_init(ks[1], d_model, d_model)
        wv, bv = _linear_init(ks[2], d_model, d_model)
        wo, bo = _linear_init(ks[3], d_model, d_model)
        w2q, b2q = _linear_init(ks[4], d_model, d_model)
        w2k, b2k = _linear_init(ks[5], d_model, d_model)
        w2v, b2v = _linear_init(ks[6], d_model, d_model)
        w2o, b2o = _linear_init(ks[7], d_model, d_model)
        wf1, bf1 = _linear_init(ks[8], d_model, d_ff)
        wf2, bf2 = _linear_init(ks[9], d_ff, d_model)
        layers.append(dict(
            ln0_a=jnp.ones((d_model,), jnp.float32), ln0_b=jnp.zeros((d_model,), jnp.float32),
            ln1_a=jnp.ones((d_model,), jnp.float32), ln1_b=jnp.zeros((d_model,), jnp.float32),
            ln2_a=jnp.ones((d_model,), jnp.float32), ln2_b=jnp.zeros((d_model,), jnp.float32),
            self_attn=(wq, bq, wk, bk, wv, bv, wo, bo),
            src_attn=(w2q, b2q, w2k, b2k, w2v, b2v, w2o, b2o),
            ffn=(wf1, bf1, wf2, bf2),
        ))
    return dict(layers=layers,
                norm_a=jnp.ones((d_model,), jnp.float32),
                norm_b=jnp.zeros((d_model,), jnp.float32))


# ----------------------------------------------------------------------------
# Pure-JAX reference (mirrors the PyTorch forward) for a correctness check
# ----------------------------------------------------------------------------
def _layer_norm_ref(x, a, b, eps=1e-6):
    mean = x.mean(-1, keepdims=True)
    xc = x - mean
    std = jnp.sqrt(jnp.sum(xc * xc, -1, keepdims=True) / (x.shape[-1] - 1))
    return a * xc / (std + eps) + b


def _mha_ref(q, k, v, mask, params, n_heads):
    wq, bq, wk, bk, wv, bv, wo, bo = params
    B, Tq, D = q.shape
    dk = D // n_heads
    qp = (q @ wq + bq).reshape(B, Tq, n_heads, dk).transpose(0, 2, 1, 3)
    kp = (k @ wk + bk).reshape(B, -1, n_heads, dk).transpose(0, 2, 1, 3)
    vp = (v @ wv + bv).reshape(B, -1, n_heads, dk).transpose(0, 2, 1, 3)
    s = jnp.einsum("bhqd,bhkd->bhqk", qp, kp) / math.sqrt(dk)
    s = jnp.where(mask[:, None] > 0, s, -1e9)
    p = jax.nn.softmax(s, axis=-1)
    o = jnp.einsum("bhqk,bhkd->bhqd", p, vp).transpose(0, 2, 1, 3).reshape(B, Tq, D)
    return o @ wo + bo


def _decoder_ref(x, memory, src_mask, tgt_mask, params, n_heads):
    for p in params["layers"]:
        nx = _layer_norm_ref(x, p["ln0_a"], p["ln0_b"])
        x = x + _mha_ref(nx, nx, nx, tgt_mask, p["self_attn"], n_heads)
        nx = _layer_norm_ref(x, p["ln1_a"], p["ln1_b"])
        x = x + _mha_ref(nx, memory, memory, src_mask, p["src_attn"], n_heads)
        nx = _layer_norm_ref(x, p["ln2_a"], p["ln2_b"])
        w1, b1, w2, b2 = p["ffn"]
        x = x + (jnp.maximum(nx @ w1 + b1, 0.0) @ w2 + b2)
    return _layer_norm_ref(x, params["norm_a"], params["norm_b"])


# ----------------------------------------------------------------------------
if __name__ == "__main__":
    B, T, S, D, H, DFF, N = 2, 16, 16, 32, 4, 64, 2

    key = jax.random.PRNGKey(0)
    kx, km, kp = jax.random.split(key, 3)
    x = jax.random.normal(kx, (B, T, D), jnp.float32)
    memory = jax.random.normal(km, (B, S, D), jnp.float32)
    tgt_mask = jnp.tril(jnp.ones((T, T), jnp.float32))[None].repeat(B, axis=0)  # causal
    src_mask = jnp.ones((B, 1, S), jnp.float32)                                 # full

    raw_params = init_params(kp, N, D, DFF)
    kparams = prepare_params(raw_params, matmul_dtype=jnp.bfloat16)

    ref = _decoder_ref(x, memory, src_mask, tgt_mask, raw_params, H)

    # 1) default tiling (single query tile): fused-QKV self-attn + inline-K/V src-attn.
    out = jax.block_until_ready(decoder(x, memory, src_mask, tgt_mask, kparams, H))
    assert out.shape == (B, T, D)
    # Tolerance covers bf16 MXU operands (weights / LN'd activations / softmax probs
    # are fed to the MXU in bf16); use matmul_dtype=jnp.float32 for strict f32 parity.
    err = float(jnp.max(jnp.abs(out - ref)))
    assert jnp.allclose(out, ref, atol=2e-2, rtol=2e-2), err

    # 2) forced query tiling (q_tile < T): exercises the precomputed-K/V path where
    #    K/V are projected exactly once per layer and reused by every query tile.
    out_t = jax.block_until_ready(
        decoder(x, memory, src_mask, tgt_mask, kparams, H, q_tile=8))
    err_t = float(jnp.max(jnp.abs(out_t - ref)))
    assert jnp.allclose(out_t, ref, atol=2e-2, rtol=2e-2), err_t

    print("KERNEL_OK")
</pallas_src>

<mosaic_0001>
module attributes {stable_mosaic.version = 11 : i64} {
  func.func @_attn_kernel(%arg0: i32, %arg1: i32, %arg2: memref<1x16x32xf32, #tpu.memory_space<vmem>>, %arg3: memref<1x16x16xf32, #tpu.memory_space<vmem>>, %arg4: memref<1x32xf32, #tpu.memory_space<vmem>>, %arg5: memref<1x32xf32, #tpu.memory_space<vmem>>, %arg6: memref<32x96xbf16, #tpu.memory_space<vmem>>, %arg7: memref<1x96xf32, #tpu.memory_space<vmem>>, %arg8: memref<32x32xbf16, #tpu.memory_space<vmem>>, %arg9: memref<1x32xf32, #tpu.memory_space<vmem>>, %arg10: memref<1x16x32xf32, #tpu.memory_space<vmem>>, %arg11: memref<16x32xf32, #tpu.memory_space<vmem>>) attributes {dimension_semantics = [#tpu.dimension_semantics<parallel>, #tpu.dimension_semantics<parallel>], iteration_bounds = array<i64: 2, 1>, scalar_prefetch = 0 : i64, scratch_operands = 1 : i64, tpu.core_type = #tpu.core_type<tc>, window_params = [{transform_indices = @transform_0, window_bounds = array<i64: 1, 16, 32>}, {transform_indices = @transform_1, window_bounds = array<i64: 1, 16, 16>}, {pipeline_mode = #tpu.pipeline_mode<synchronous>, transform_indices = @transform_2, window_bounds = array<i64: 1, 32>}, {pipeline_mode = #tpu.pipeline_mode<synchronous>, transform_indices = @transform_3, window_bounds = array<i64: 1, 32>}, {pipeline_mode = #tpu.pipeline_mode<synchronous>, transform_indices = @transform_4, window_bounds = array<i64: 32, 96>}, {pipeline_mode = #tpu.pipeline_mode<synchronous>, transform_indices = @transform_5, window_bounds = array<i64: 1, 96>}, {pipeline_mode = #tpu.pipeline_mode<synchronous>, transform_indices = @transform_6, window_bounds = array<i64: 32, 32>}, {pipeline_mode = #tpu.pipeline_mode<synchronous>, transform_indices = @transform_7, window_bounds = array<i64: 1, 32>}, {transform_indices = @transform_8, window_bounds = array<i64: 1, 16, 32>}]} {
    %c0 = arith.constant 0 : index
    %c0_0 = arith.constant 0 : index
    %c0_1 = arith.constant 0 : index
    %0 = vector.load %arg2[%c0, %c0_0, %c0_1] : memref<1x16x32xf32, #tpu.memory_space<vmem>>, vector<1x16x32xf32>
    %1 = vector.shape_cast %0 : vector<1x16x32xf32> to vector<16x32xf32>
    %c0_2 = arith.constant 0 : index
    %c0_3 = arith.constant 0 : index
    %2 = vector.load %arg4[%c0_2, %c0_3] : memref<1x32xf32, #tpu.memory_space<vmem>>, vector<1x32xf32>
    %c0_4 = arith.constant 0 : index
    %c0_5 = arith.constant 0 : index
    %3 = vector.load %arg5[%c0_4, %c0_5] : memref<1x32xf32, #tpu.memory_space<vmem>>, vector<1x32xf32>
    %cst = arith.constant dense<0.000000e+00> : vector<16xf32>
    %4 = vector.multi_reduction <add>, %1, %cst [1] : vector<16x32xf32> to vector<16xf32>
    %5 = vector.shape_cast %4 : vector<16xf32> to vector<16x1xf32>
    %cst_6 = arith.constant 3.200000e+01 : f32
    %6 = vector.broadcast %cst_6 : f32 to vector<16x1xf32>
    %7 = arith.divf %5, %6 : vector<16x1xf32>
    %8 = vector.broadcast %7 : vector<16x1xf32> to vector<16x32xf32>
    %9 = arith.subf %1, %8 : vector<16x32xf32>
    %10 = arith.mulf %9, %9 : vector<16x32xf32>
    %cst_7 = arith.constant dense<0.000000e+00> : vector<16xf32>
    %11 = vector.multi_reduction <add>, %10, %cst_7 [1] : vector<16x32xf32> to vector<16xf32>
    %12 = vector.shape_cast %11 : vector<16xf32> to vector<16x1xf32>
    %cst_8 = arith.constant 0.0322580636 : f32
    %13 = vector.broadcast %cst_8 : f32 to vector<16x1xf32>
    %14 = arith.mulf %12, %13 : vector<16x1xf32>
    %15 = math.sqrt %14 : vector<16x1xf32>
    %cst_9 = arith.constant 9.99999997E-7 : f32
    %16 = vector.broadcast %cst_9 : f32 to vector<16x1xf32>
    %17 = arith.addf %15, %16 : vector<16x1xf32>
    %18 = tpu.reciprocal %17 : vector<16x1xf32> -> vector<16x1xf32>
    %19 = vector.broadcast %18 : vector<16x1xf32> to vector<16x32xf32>
    %20 = arith.mulf %9, %19 : vector<16x32xf32>
    %21 = vector.broadcast %2 : vector<1x32xf32> to vector<16x32xf32>
    %22 = arith.mulf %21, %20 : vector<16x32xf32>
    %23 = vector.broadcast %3 : vector<1x32xf32> to vector<16x32xf32>
    %24 = arith.addf %22, %23 : vector<16x32xf32>
    %25 = arith.truncf %24 : vector<16x32xf32> to vector<16x32xbf16>
    %c0_10 = arith.constant 0 : index
    %c0_11 = arith.constant 0 : index
    %26 = vector.load %arg6[%c0_10, %c0_11] : memref<32x96xbf16, #tpu.memory_space<vmem>>, vector<32x96xbf16>
    %cst_12 = arith.constant dense<0.000000e+00> : vector<16x96xf32>
    %27 = tpu.matmul %25, %26, %cst_12 {dimension_numbers = #tpu.dot_dimension_numbers<[1], [0], [0], [1], [0, 0, 1, 1], [], []>} : vector<16x32xbf16>, vector<32x96xbf16>, vector<16x96xf32> -> vector<16x96xf32>
    %c0_13 = arith.constant 0 : index
    %c0_14 = arith.constant 0 : index
    %28 = vector.load %arg7[%c0_13, %c0_14] : memref<1x96xf32, #tpu.memory_space<vmem>>, vector<1x96xf32>
    %29 = vector.broadcast %28 : vector<1x96xf32> to vector<16x96xf32>
    %30 = arith.addf %27, %29 : vector<16x96xf32>
    %31 = vector.extract_strided_slice %30 {offsets = [0, 0], sizes = [16, 32], strides = [1, 1]} : vector<16x96xf32> to vector<16x32xf32>
    %cst_15 = arith.constant 0.353553385 : f32
    %32 = vector.broadcast %cst_15 : f32 to vector<16x32xf32>
    %33 = arith.mulf %31, %32 : vector<16x32xf32>
    %34 = arith.truncf %33 : vector<16x32xf32> to vector<16x32xbf16>
    %35 = vector.extract_strided_slice %30 {offsets = [0, 32], sizes = [16, 32], strides = [1, 1]} : vector<16x96xf32> to vector<16x32xf32>
    %36 = arith.truncf %35 : vector<16x32xf32> to vector<16x32xbf16>
    %37 = vector.extract_strided_slice %30 {offsets = [0, 64], sizes = [16, 32], strides = [1, 1]} : vector<16x96xf32> to vector<16x32xf32>
    %38 = arith.truncf %37 : vector<16x32xf32> to vector<16x32xbf16>
    %c0_16 = arith.constant 0 : index
    %c0_17 = arith.constant 0 : index
    %c0_18 = arith.constant 0 : index
    %39 = vector.load %arg3[%c0_16, %c0_17, %c0_18] : memref<1x16x16xf32, #tpu.memory_space<vmem>>, vector<1x16x16xf32>
    %40 = vector.shape_cast %39 : vector<1x16x16xf32> to vector<16x16xf32>
    %cst_19 = arith.constant 0.000000e+00 : f32
    %41 = vector.broadcast %cst_19 : f32 to vector<16x16xf32>
    %42 = arith.cmpf ogt, %40, %41 : vector<16x16xf32>
    %43 = vector.extract_strided_slice %34 {offsets = [0, 0], sizes = [16, 8], strides = [1, 1]} : vector<16x32xbf16> to vector<16x8xbf16>
    %44 = vector.extract_strided_slice %36 {offsets = [0, 0], sizes = [16, 8], strides = [1, 1]} : vector<16x32xbf16> to vector<16x8xbf16>
    %cst_20 = arith.constant dense<0.000000e+00> : vector<16x16xf32>
    %45 = tpu.matmul %43, %44, %cst_20 {dimension_numbers = #tpu.dot_dimension_numbers<[1], [1], [0], [0], [0, 0, 1, 0], [], []>} : vector<16x8xbf16>, vector<16x8xbf16>, vector<16x16xf32> -> vector<16x16xf32>
    %cst_21 = arith.constant -1.000000e+09 : f32
    %46 = vector.broadcast %cst_21 : f32 to vector<16x16xf32>
    %47 = arith.select %42, %45, %46 : vector<16x16xi1>, vector<16x16xf32>
    %cst_22 = arith.constant dense<0xFF800000> : vector<16xf32>
    %48 = vector.multi_reduction <maximumf>, %47, %cst_22 [1] : vector<16x16xf32> to vector<16xf32>
    %49 = vector.shape_cast %48 : vector<16xf32> to vector<16x1xf32>
    %50 = vector.broadcast %49 : vector<16x1xf32> to vector<16x16xf32>
    %51 = arith.subf %47, %50 : vector<16x16xf32>
    %52 = math.exp %51 : vector<16x16xf32>
    %cst_23 = arith.constant dense<0.000000e+00> : vector<16xf32>
    %53 = vector.multi_reduction <add>, %52, %cst_23 [1] : vector<16x16xf32> to vector<16xf32>
    %54 = vector.shape_cast %53 : vector<16xf32> to vector<16x1xf32>
    %55 = tpu.reciprocal %54 : vector<16x1xf32> -> vector<16x1xf32>
    %56 = vector.broadcast %55 : vector<16x1xf32> to vector<16x16xf32>
    %57 = arith.mulf %52, %56 : vector<16x16xf32>
    %58 = arith.truncf %57 : vector<16x16xf32> to vector<16x16xbf16>
    %59 = vector.extract_strided_slice %38 {offsets = [0, 0], sizes = [16, 8], strides = [1, 1]} : vector<16x32xbf16> to vector<16x8xbf16>
    %cst_24 = arith.constant dense<0.000000e+00> : vector<16x8xf32>
    %60 = tpu.matmul %58, %59, %cst_24 {dimension_numbers = #tpu.dot_dimension_numbers<[1], [0], [0], [1], [0, 0, 1, 1], [], []>} : vector<16x16xbf16>, vector<16x8xbf16>, vector<16x8xf32> -> vector<16x8xf32>
    %c0_25 = arith.constant 0 : index
    %c0_26 = arith.constant 0 : index
    %61 = vector.load %arg11[%c0_25, %c0_26] : memref<16x32xf32, #tpu.memory_space<vmem>>, vector<16x8xf32>
    tpu.vector_store %arg11[%c0_25, %c0_26], %60 {strides = array<i32>} : memref<16x32xf32, #tpu.memory_space<vmem>>, vector<16x8xf32>,
    %62 = vector.extract_strided_slice %34 {offsets = [0, 8], sizes = [16, 8], strides = [1, 1]} : vector<16x32xbf16> to vector<16x8xbf16>
    %63 = vector.extract_strided_slice %36 {offsets = [0, 8], sizes = [16, 8], strides = [1, 1]} : vector<16x32xbf16> to vector<16x8xbf16>
    %cst_27 = arith.constant dense<0.000000e+00> : vector<16x16xf32>
    %64 = tpu.matmul %62, %63, %cst_27 {dimension_numbers = #tpu.dot_dimension_numbers<[1], [1], [0], [0], [0, 0, 1, 0], [], []>} : vector<16x8xbf16>, vector<16x8xbf16>, vector<16x16xf32> -> vector<16x16xf32>
    %cst_28 = arith.constant -1.000000e+09 : f32
    %65 = vector.broadcast %cst_28 : f32 to vector<16x16xf32>
    %66 = arith.select %42, %64, %65 : vector<16x16xi1>, vector<16x16xf32>
    %cst_29 = arith.constant dense<0xFF800000> : vector<16xf32>
    %67 = vector.multi_reduction <maximumf>, %66, %cst_29 [1] : vector<16x16xf32> to vector<16xf32>
    %68 = vector.shape_cast %67 : vector<16xf32> to vector<16x1xf32>
    %69 = vector.broadcast %68 : vector<16x1xf32> to vector<16x16xf32>
    %70 = arith.subf %66, %69 : vector<16x16xf32>
    %71 = math.exp %70 : vector<16x16xf32>
    %cst_30 = arith.constant dense<0.000000e+00> : vector<16xf32>
    %72 = vector.multi_reduction <add>, %71, %cst_30 [1] : vector<16x16xf32> to vector<16xf32>
    %73 = vector.shape_cast %72 : vector<16xf32> to vector<16x1xf32>
    %74 = tpu.reciprocal %73 : vector<16x1xf32> -> vector<16x1xf32>
    %75 = vector.broadcast %74 : vector<16x1xf32> to vector<16x16xf32>
    %76 = arith.mulf %71, %75 : vector<16x16xf32>
    %77 = arith.truncf %76 : vector<16x16xf32> to vector<16x16xbf16>
    %78 = vector.extract_strided_slice %38 {offsets = [0, 8], sizes = [16, 8], strides = [1, 1]} : vector<16x32xbf16> to vector<16x8xbf16>
    %cst_31 = arith.constant dense<0.000000e+00> : vector<16x8xf32>
    %79 = tpu.matmul %77, %78, %cst_31 {dimension_numbers = #tpu.dot_dimension_numbers<[1], [0], [0], [1], [0, 0, 1, 1], [], []>} : vector<16x16xbf16>, vector<16x8xbf16>, vector<16x8xf32> -> vector<16x8xf32>
    %c0_32 = arith.constant 0 : index
    %c8 = arith.constant 8 : index
    %80 = vector.load %arg11[%c0_32, %c8] : memref<16x32xf32, #tpu.memory_space<vmem>>, vector<16x8xf32>
    tpu.vector_store %arg11[%c0_32, %c8], %79 {strides = array<i32>} : memref<16x32xf32, #tpu.memory_space<vmem>>, vector<16x8xf32>,
    %81 = vector.extract_strided_slice %34 {offsets = [0, 16], sizes = [16, 8], strides = [1, 1]} : vector<16x32xbf16> to vector<16x8xbf16>
    %82 = vector.extract_strided_slice %36 {offsets = [0, 16], sizes = [16, 8], strides = [1, 1]} : vector<16x32xbf16> to vector<16x8xbf16>
    %cst_33 = arith.constant dense<0.000000e+00> : vector<16x16xf32>
    %83 = tpu.matmul %81, %82, %cst_33 {dimension_numbers = #tpu.dot_dimension_numbers<[1], [1], [0], [0], [0, 0, 1, 0], [], []>} : vector<16x8xbf16>, vector<16x8xbf16>, vector<16x16xf32> -> vector<16x16xf32>
    %cst_34 = arith.constant -1.000000e+09 : f32
    %84 = vector.broadcast %cst_34 : f32 to vector<16x16xf32>
    %85 = arith.select %42, %83, %84 : vector<16x16xi1>, vector<16x16xf32>
    %cst_35 = arith.constant dense<0xFF800000> : vector<16xf32>
    %86 = vector.multi_reduction <maximumf>, %85, %cst_35 [1] : vector<16x16xf32> to vector<16xf32>
    %87 = vector.shape_cast %86 : vector<16xf32> to vector<16x1xf32>
    %88 = vector.broadcast %87 : vector<16x1xf32> to vector<16x16xf32>
    %89 = arith.subf %85, %88 : vector<16x16xf32>
    %90 = math.exp %89 : vector<16x16xf32>
    %cst_36 = arith.constant dense<0.000000e+00> : vector<16xf32>
    %91 = vector.multi_reduction <add>, %90, %cst_36 [1] : vector<16x16xf32> to vector<16xf32>
    %92 = vector.shape_cast %91 : vector<16xf32> to vector<16x1xf32>
    %93 = tpu.reciprocal %92 : vector<16x1xf32> -> vector<16x1xf32>
    %94 = vector.broadcast %93 : vector<16x1xf32> to vector<16x16xf32>
    %95 = arith.mulf %90, %94 : vector<16x16xf32>
    %96 = arith.truncf %95 : vector<16x16xf32> to vector<16x16xbf16>
    %97 = vector.extract_strided_slice %38 {offsets = [0, 16], sizes = [16, 8], strides = [1, 1]} : vector<16x32xbf16> to vector<16x8xbf16>
    %cst_37 = arith.constant dense<0.000000e+00> : vector<16x8xf32>
    %98 = tpu.matmul %96, %97, %cst_37 {dimension_numbers = #tpu.dot_dimension_numbers<[1], [0], [0], [1], [0, 0, 1, 1], [], []>} : vector<16x16xbf16>, vector<16x8xbf16>, vector<16x8xf32> -> vector<16x8xf32>
    %c0_38 = arith.constant 0 : index
    %c16 = arith.constant 16 : index
    %99 = vector.load %arg11[%c0_38, %c16] : memref<16x32xf32, #tpu.memory_space<vmem>>, vector<16x8xf32>
    tpu.vector_store %arg11[%c0_38, %c16], %98 {strides = array<i32>} : memref<16x32xf32, #tpu.memory_space<vmem>>, vector<16x8xf32>,
    %100 = vector.extract_strided_slice %34 {offsets = [0, 24], sizes = [16, 8], strides = [1, 1]} : vector<16x32xbf16> to vector<16x8xbf16>
    %101 = vector.extract_strided_slice %36 {offsets = [0, 24], sizes = [16, 8], strides = [1, 1]} : vector<16x32xbf16> to vector<16x8xbf16>
    %cst_39 = arith.constant dense<0.000000e+00> : vector<16x16xf32>
    %102 = tpu.matmul %100, %101, %cst_39 {dimension_numbers = #tpu.dot_dimension_numbers<[1], [1], [0], [0], [0, 0, 1, 0], [], []>} : vector<16x8xbf16>, vector<16x8xbf16>, vector<16x16xf32> -> vector<16x16xf32>
    %cst_40 = arith.constant -1.000000e+09 : f32
    %103 = vector.broadcast %cst_40 : f32 to vector<16x16xf32>
    %104 = arith.select %42, %102, %103 : vector<16x16xi1>, vector<16x16xf32>
    %cst_41 = arith.constant dense<0xFF800000> : vector<16xf32>
    %105 = vector.multi_reduction <maximumf>, %104, %cst_41 [1] : vector<16x16xf32> to vector<16xf32>
    %106 = vector.shape_cast %105 : vector<16xf32> to vector<16x1xf32>
    %107 = vector.broadcast %106 : vector<16x1xf32> to vector<16x16xf32>
    %108 = arith.subf %104, %107 : vector<16x16xf32>
    %109 = math.exp %108 : vector<16x16xf32>
    %cst_42 = arith.constant dense<0.000000e+00> : vector<16xf32>
    %110 = vector.multi_reduction <add>, %109, %cst_42 [1] : vector<16x16xf32> to vector<16xf32>
    %111 = vector.shape_cast %110 : vector<16xf32> to vector<16x1xf32>
    %112 = tpu.reciprocal %111 : vector<16x1xf32> -> vector<16x1xf32>
    %113 = vector.broadcast %112 : vector<16x1xf32> to vector<16x16xf32>
    %114 = arith.mulf %109, %113 : vector<16x16xf32>
    %115 = arith.truncf %114 : vector<16x16xf32> to vector<16x16xbf16>
    %116 = vector.extract_strided_slice %38 {offsets = [0, 24], sizes = [16, 8], strides = [1, 1]} : vector<16x32xbf16> to vector<16x8xbf16>
    %cst_43 = arith.constant dense<0.000000e+00> : vector<16x8xf32>
    %117 = tpu.matmul %115, %116, %cst_43 {dimension_numbers = #tpu.dot_dimension_numbers<[1], [0], [0], [1], [0, 0, 1, 1], [], []>} : vector<16x16xbf16>, vector<16x8xbf16>, vector<16x8xf32> -> vector<16x8xf32>
    %c0_44 = arith.constant 0 : index
    %c24 = arith.constant 24 : index
    %118 = vector.load %arg11[%c0_44, %c24] : memref<16x32xf32, #tpu.memory_space<vmem>>, vector<16x8xf32>
    tpu.vector_store %arg11[%c0_44, %c24], %117 {strides = array<i32>} : memref<16x32xf32, #tpu.memory_space<vmem>>, vector<16x8xf32>,
    %c0_45 = arith.constant 0 : index
    %c0_46 = arith.constant 0 : index
    %119 = vector.load %arg11[%c0_45, %c0_46] : memref<16x32xf32, #tpu.memory_space<vmem>>, vector<16x32xf32>
    %120 = arith.truncf %119 : vector<16x32xf32> to vector<16x32xbf16>
    %c0_47 = arith.constant 0 : index
    %c0_48 = arith.constant 0 : index
    %121 = vector.load %arg8[%c0_47, %c0_48] : memref<32x32xbf16, #tpu.memory_space<vmem>>, vector<32x32xbf16>
    %cst_49 = arith.constant dense<0.000000e+00> : vector<16x32xf32>
    %122 = tpu.matmul %120, %121, %cst_49 {dimension_numbers = #tpu.dot_dimension_numbers<[1], [0], [0], [1], [0, 0, 1, 1], [], []>} : vector<16x32xbf16>, vector<32x32xbf16>, vector<16x32xf32> -> vector<16x32xf32>
    %123 = arith.addf %1, %122 : vector<16x32xf32>
    %c0_50 = arith.constant 0 : index
    %c0_51 = arith.constant 0 : index
    %124 = vector.load %arg9[%c0_50, %c0_51] : memref<1x32xf32, #tpu.memory_space<vmem>>, vector<1x32xf32>
    %125 = vector.broadcast %124 : vector<1x32xf32> to vector<16x32xf32>
    %126 = arith.addf %123, %125 : vector<16x32xf32>
    %c0_52 = arith.constant 0 : index
    %c0_53 = arith.constant 0 : index
    %c0_54 = arith.constant 0 : index
    %127 = vector.load %arg10[%c0_52, %c0_53, %c0_54] : memref<1x16x32xf32, #tpu.memory_space<vmem>>, vector<1x16x32xf32>
    %128 = vector.shape_cast %127 : vector<1x16x32xf32> to vector<16x32xf32>
    %129 = vector.shape_cast %126 : vector<16x32xf32> to vector<1x16x32xf32>
    tpu.vector_store %arg10[%c0_52, %c0_53, %c0_54], %129 {strides = array<i32>} : memref<1x16x32xf32, #tpu.memory_space<vmem>>, vector<1x16x32xf32>,
    return
  }
  func.func @transform_0(%arg0: i32, %arg1: i32) -> (i32, i32, i32) {
    %c0_i32 = arith.constant 0 : i32
    %c0_i32_0 = arith.constant 0 : i32
    return %arg0, %arg1, %c0_i32 : i32, i32, i32
  }
  func.func @transform_1(%arg0: i32, %arg1: i32) -> (i32, i32, i32) {
    %c0_i32 = arith.constant 0 : i32
    %c0_i32_0 = arith.constant 0 : i32
    return %arg0, %arg1, %c0_i32 : i32, i32, i32
  }
  func.func @transform_2(%arg0: i32, %arg1: i32) -> (i32, i32) {
    %c0_i32 = arith.constant 0 : i32
    %c0_i32_0 = arith.constant 0 : i32
    %c0_i32_1 = arith.constant 0 : i32
    return %c0_i32, %c0_i32_0 : i32, i32
  }
  func.func @transform_3(%arg0: i32, %arg1: i32) -> (i32, i32) {
    %c0_i32 = arith.constant 0 : i32
    %c0_i32_0 = arith.constant 0 : i32
    %c0_i32_1 = arith.constant 0 : i32
    return %c0_i32, %c0_i32_0 : i32, i32
  }
  func.func @transform_4(%arg0: i32, %arg1: i32) -> (i32, i32) {
    %c0_i32 = arith.constant 0 : i32
    %c0_i32_0 = arith.constant 0 : i32
    %c0_i32_1 = arith.constant 0 : i32
    return %c0_i32, %c0_i32_0 : i32, i32
  }
  func.func @transform_5(%arg0: i32, %arg1: i32) -> (i32, i32) {
    %c0_i32 = arith.constant 0 : i32
    %c0_i32_0 = arith.constant 0 : i32
    %c0_i32_1 = arith.constant 0 : i32
    return %c0_i32, %c0_i32_0 : i32, i32
  }
  func.func @transform_6(%arg0: i32, %arg1: i32) -> (i32, i32) {
    %c0_i32 = arith.constant 0 : i32
    %c0_i32_0 = arith.constant 0 : i32
    %c0_i32_1 = arith.constant 0 : i32
    return %c0_i32, %c0_i32_0 : i32, i32
  }
  func.func @transform_7(%arg0: i32, %arg1: i32) -> (i32, i32) {
    %c0_i32 = arith.constant 0 : i32
    %c0_i32_0 = arith.constant 0 : i32
    %c0_i32_1 = arith.constant 0 : i32
    return %c0_i32, %c0_i32_0 : i32, i32
  }
  func.func @transform_8(%arg0: i32, %arg1: i32) -> (i32, i32, i32) {
    %c0_i32 = arith.constant 0 : i32
    %c0_i32_0 = arith.constant 0 : i32
    return %arg0, %arg1, %c0_i32 : i32, i32, i32
  }
}

module attributes {stable_mosaic.version = 11 : i64} {
  func.func @_attn_kernel(%arg0: i32, %arg1: i32, %arg2: memref<1x16x32xf32, #tpu.memory_space<vmem>>, %arg3: memref<1x16x16xf32, #tpu.memory_space<vmem>>, %arg4: memref<1x32xf32, #tpu.memory_space<vmem>>, %arg5: memref<1x32xf32, #tpu.memory_space<vmem>>, %arg6: memref<32x96xbf16, #tpu.memory_space<vmem>>, %arg7: memref<1x96xf32, #tpu.memory_space<vmem>>, %arg8: memref<32x32xbf16, #tpu.memory_space<vmem>>, %arg9: memref<1x32xf32, #tpu.memory_space<vmem>>, %arg10: memref<1x16x32xf32, #tpu.memory_space<vmem>>, %arg11: memref<16x32xf32, #tpu.memory_space<vmem>>) attributes {dimension_semantics = [#tpu.dimension_semantics<parallel>, #tpu.dimension_semantics<parallel>], iteration_bounds = array<i64: 2, 1>, scalar_prefetch = 0 : i64, scratch_operands = 1 : i64, tpu.core_type = #tpu.core_type<tc>, window_params = [{transform_indices = @transform_0, window_bounds = array<i64: 1, 16, 32>}, {transform_indices = @transform_1, window_bounds = array<i64: 1, 16, 16>}, {pipeline_mode = #tpu.pipeline_mode<synchronous>, transform_indices = @transform_2, window_bounds = array<i64: 1, 32>}, {pipeline_mode = #tpu.pipeline_mode<synchronous>, transform_indices = @transform_3, window_bounds = array<i64: 1, 32>}, {pipeline_mode = #tpu.pipeline_mode<synchronous>, transform_indices = @transform_4, window_bounds = array<i64: 32, 96>}, {pipeline_mode = #tpu.pipeline_mode<synchronous>, transform_indices = @transform_5, window_bounds = array<i64: 1, 96>}, {pipeline_mode = #tpu.pipeline_mode<synchronous>, transform_indices = @transform_6, window_bounds = array<i64: 32, 32>}, {pipeline_mode = #tpu.pipeline_mode<synchronous>, transform_indices = @transform_7, window_bounds = array<i64: 1, 32>}, {transform_indices = @transform_8, window_bounds = array<i64: 1, 16, 32>}]} {
    %c0 = arith.constant 0 : index
    %c0_0 = arith.constant 0 : index
    %c0_1 = arith.constant 0 : index
    %0 = vector.load %arg2[%c0, %c0_0, %c0_1] : memref<1x16x32xf32, #tpu.memory_space<vmem>>, vector<1x16x32xf32>
    %1 = vector.shape_cast %0 : vector<1x16x32xf32> to vector<16x32xf32>
    %c0_2 = arith.constant 0 : index
    %c0_3 = arith.constant 0 : index
    %2 = vector.load %arg4[%c0_2, %c0_3] : memref<1x32xf32, #tpu.memory_space<vmem>>, vector<1x32xf32>
    %c0_4 = arith.constant 0 : index
    %c0_5 = arith.constant 0 : index
    %3 = vector.load %arg5[%c0_4, %c0_5] : memref<1x32xf32, #tpu.memory_space<vmem>>, vector<1x32xf32>
    %cst = arith.constant dense<0.000000e+00> : vector<16xf32>
    %4 = vector.multi_reduction <add>, %1, %cst [1] : vector<16x32xf32> to vector<16xf32>
    %5 = vector.shape_cast %4 : vector<16xf32> to vector<16x1xf32>
    %cst_6 = arith.constant 3.200000e+01 : f32
    %6 = vector.broadcast %cst_6 : f32 to vector<16x1xf32>
    %7 = arith.divf %5, %6 : vector<16x1xf32>
    %8 = vector.broadcast %7 : vector<16x1xf32> to vector<16x32xf32>
    %9 = arith.subf %1, %8 : vector<16x32xf32>
    %10 = arith.mulf %9, %9 : vector<16x32xf32>
    %cst_7 = arith.constant dense<0.000000e+00> : vector<16xf32>
    %11 = vector.multi_reduction <add>, %10, %cst_7 [1] : vector<16x32xf32> to vector<16xf32>
    %12 = vector.shape_cast %11 : vector<16xf32> to vector<16x1xf32>
    %cst_8 = arith.constant 0.0322580636 : f32
    %13 = vector.broadcast %cst_8 : f32 to vector<16x1xf32>
    %14 = arith.mulf %12, %13 : vector<16x1xf32>
    %15 = math.sqrt %14 : vector<16x1xf32>
    %cst_9 = arith.constant 9.99999997E-7 : f32
    %16 = vector.broadcast %cst_9 : f32 to vector<16x1xf32>
    %17 = arith.addf %15, %16 : vector<16x1xf32>
    %18 = tpu.reciprocal %17 : vector<16x1xf32> -> vector<16x1xf32>
    %19 = vector.broadcast %18 : vector<16x1xf32> to vector<16x32xf32>
    %20 = arith.mulf %9, %19 : vector<16x32xf32>
    %21 = vector.broadcast %2 : vector<1x32xf32> to vector<16x32xf32>
    %22 = arith.mulf %21, %20 : vector<16x32xf32>
    %23 = vector.broadcast %3 : vector<1x32xf32> to vector<16x32xf32>
    %24 = arith.addf %22, %23 : vector<16x32xf32>
    %25 = arith.truncf %24 : vector<16x32xf32> to vector<16x32xbf16>
    %c0_10 = arith.constant 0 : index
    %c0_11 = arith.constant 0 : index
    %26 = vector.load %arg6[%c0_10, %c0_11] : memref<32x96xbf16, #tpu.memory_space<vmem>>, vector<32x96xbf16>
    %cst_12 = arith.constant dense<0.000000e+00> : vector<16x96xf32>
    %27 = tpu.matmul %25, %26, %cst_12 {dimension_numbers = #tpu.dot_dimension_numbers<[1], [0], [0], [1], [0, 0, 1, 1], [], []>} : vector<16x32xbf16>, vector<32x96xbf16>, vector<16x96xf32> -> vector<16x96xf32>
    %c0_13 = arith.constant 0 : index
    %c0_14 = arith.constant 0 : index
    %28 = vector.load %arg7[%c0_13, %c0_14] : memref<1x96xf32, #tpu.memory_space<vmem>>, vector<1x96xf32>
    %29 = vector.broadcast %28 : vector<1x96xf32> to vector<16x96xf32>
    %30 = arith.addf %27, %29 : vector<16x96xf32>
    %31 = vector.extract_strided_slice %30 {offsets = [0, 0], sizes = [16, 32], strides = [1, 1]} : vector<16x96xf32> to vector<16x32xf32>
    %cst_15 = arith.constant 0.353553385 : f32
    %32 = vector.broadcast %cst_15 : f32 to vector<16x32xf32>
    %33 = arith.mulf %31, %32 : vector<16x32xf32>
    %34 = arith.truncf %33 : vector<16x32xf32> to vector<16x32xbf16>
    %35 = vector.extract_strided_slice %30 {offsets = [0, 32], sizes = [16, 32], strides = [1, 1]} : vector<16x96xf32> to vector<16x32xf32>
    %36 = arith.truncf %35 : vector<16x32xf32> to vector<16x32xbf16>
    %37 = vector.extract_strided_slice %30 {offsets = [0, 64], sizes = [16, 32], strides = [1, 1]} : vector<16x96xf32> to vector<16x32xf32>
    %38 = arith.truncf %37 : vector<16x32xf32> to vector<16x32xbf16>
    %c0_16 = arith.constant 0 : index
    %c0_17 = arith.constant 0 : index
    %c0_18 = arith.constant 0 : index
    %39 = vector.load %arg3[%c0_16, %c0_17, %c0_18] : memref<1x16x16xf32, #tpu.memory_space<vmem>>, vector<1x16x16xf32>
    %40 = vector.shape_cast %39 : vector<1x16x16xf32> to vector<16x16xf32>
    %cst_19 = arith.constant 0.000000e+00 : f32
    %41 = vector.broadcast %cst_19 : f32 to vector<16x16xf32>
    %42 = arith.cmpf ogt, %40, %41 : vector<16x16xf32>
    %43 = vector.extract_strided_slice %34 {offsets = [0, 0], sizes = [16, 8], strides = [1, 1]} : vector<16x32xbf16> to vector<16x8xbf16>
    %44 = vector.extract_strided_slice %36 {offsets = [0, 0], sizes = [16, 8], strides = [1, 1]} : vector<16x32xbf16> to vector<16x8xbf16>
    %cst_20 = arith.constant dense<0.000000e+00> : vector<16x16xf32>
    %45 = tpu.matmul %43, %44, %cst_20 {dimension_numbers = #tpu.dot_dimension_numbers<[1], [1], [0], [0], [0, 0, 1, 0], [], []>} : vector<16x8xbf16>, vector<16x8xbf16>, vector<16x16xf32> -> vector<16x16xf32>
    %cst_21 = arith.constant -1.000000e+09 : f32
    %46 = vector.broadcast %cst_21 : f32 to vector<16x16xf32>
    %47 = arith.select %42, %45, %46 : vector<16x16xi1>, vector<16x16xf32>
    %cst_22 = arith.constant dense<0xFF800000> : vector<16xf32>
    %48 = vector.multi_reduction <maximumf>, %47, %cst_22 [1] : vector<16x16xf32> to vector<16xf32>
    %49 = vector.shape_cast %48 : vector<16xf32> to vector<16x1xf32>
    %50 = vector.broadcast %49 : vector<16x1xf32> to vector<16x16xf32>
    %51 = arith.subf %47, %50 : vector<16x16xf32>
    %52 = math.exp %51 : vector<16x16xf32>
    %cst_23 = arith.constant dense<0.000000e+00> : vector<16xf32>
    %53 = vector.multi_reduction <add>, %52, %cst_23 [1] : vector<16x16xf32> to vector<16xf32>
    %54 = vector.shape_cast %53 : vector<16xf32> to vector<16x1xf32>
    %55 = tpu.reciprocal %54 : vector<16x1xf32> -> vector<16x1xf32>
    %56 = vector.broadcast %55 : vector<16x1xf32> to vector<16x16xf32>
    %57 = arith.mulf %52, %56 : vector<16x16xf32>
    %58 = arith.truncf %57 : vector<16x16xf32> to vector<16x16xbf16>
    %59 = vector.extract_strided_slice %38 {offsets = [0, 0], sizes = [16, 8], strides = [1, 1]} : vector<16x32xbf16> to vector<16x8xbf16>
    %cst_24 = arith.constant dense<0.000000e+00> : vector<16x8xf32>
    %60 = tpu.matmul %58, %59, %cst_24 {dimension_numbers = #tpu.dot_dimension_numbers<[1], [0], [0], [1], [0, 0, 1, 1], [], []>} : vector<16x16xbf16>, vector<16x8xbf16>, vector<16x8xf32> -> vector<16x8xf32>
    %c0_25 = arith.constant 0 : index
    %c0_26 = arith.constant 0 : index
    %61 = vector.load %arg11[%c0_25, %c0_26] : memref<16x32xf32, #tpu.memory_space<vmem>>, vector<16x8xf32>
    tpu.vector_store %arg11[%c0_25, %c0_26], %60 {strides = array<i32>} : memref<16x32xf32, #tpu.memory_space<vmem>>, vector<16x8xf32>,
    %62 = vector.extract_strided_slice %34 {offsets = [0, 8], sizes = [16, 8], strides = [1, 1]} : vector<16x32xbf16> to vector<16x8xbf16>
    %63 = vector.extract_strided_slice %36 {offsets = [0, 8], sizes = [16, 8], strides = [1, 1]} : vector<16x32xbf16> to vector<16x8xbf16>
    %cst_27 = arith.constant dense<0.000000e+00> : vector<16x16xf32>
    %64 = tpu.matmul %62, %63, %cst_27 {dimension_numbers = #tpu.dot_dimension_numbers<[1], [1], [0], [0], [0, 0, 1, 0], [], []>} : vector<16x8xbf16>, vector<16x8xbf16>, vector<16x16xf32> -> vector<16x16xf32>
    %cst_28 = arith.constant -1.000000e+09 : f32
    %65 = vector.broadcast %cst_28 : f32 to vector<16x16xf32>
    %66 = arith.select %42, %64, %65 : vector<16x16xi1>, vector<16x16xf32>
    %cst_29 = arith.constant dense<0xFF800000> : vector<16xf32>
    %67 = vector.multi_reduction <maximumf>, %66, %cst_29 [1] : vector<16x16xf32> to vector<16xf32>
    %68 = vector.shape_cast %67 : vector<16xf32> to vector<16x1xf32>
    %69 = vector.broadcast %68 : vector<16x1xf32> to vector<16x16xf32>
    %70 = arith.subf %66, %69 : vector<16x16xf32>
    %71 = math.exp %70 : vector<16x16xf32>
    %cst_30 = arith.constant dense<0.000000e+00> : vector<16xf32>
    %72 = vector.multi_reduction <add>, %71, %cst_30 [1] : vector<16x16xf32> to vector<16xf32>
    %73 = vector.shape_cast %72 : vector<16xf32> to vector<16x1xf32>
    %74 = tpu.reciprocal %73 : vector<16x1xf32> -> vector<16x1xf32>
    %75 = vector.broadcast %74 : vector<16x1xf32> to vector<16x16xf32>
    %76 = arith.mulf %71, %75 : vector<16x16xf32>
    %77 = arith.truncf %76 : vector<16x16xf32> to vector<16x16xbf16>
    %78 = vector.extract_strided_slice %38 {offsets = [0, 8], sizes = [16, 8], strides = [1, 1]} : vector<16x32xbf16> to vector<16x8xbf16>
    %cst_31 = arith.constant dense<0.000000e+00> : vector<16x8xf32>
    %79 = tpu.matmul %77, %78, %cst_31 {dimension_numbers = #tpu.dot_dimension_numbers<[1], [0], [0], [1], [0, 0, 1, 1], [], []>} : vector<16x16xbf16>, vector<16x8xbf16>, vector<16x8xf32> -> vector<16x8xf32>
    %c0_32 = arith.constant 0 : index
    %c8 = arith.constant 8 : index
    %80 = vector.load %arg11[%c0_32, %c8] : memref<16x32xf32, #tpu.memory_space<vmem>>, vector<16x8xf32>
    tpu.vector_store %arg11[%c0_32, %c8], %79 {strides = array<i32>} : memref<16x32xf32, #tpu.memory_space<vmem>>, vector<16x8xf32>,
    %81 = vector.extract_strided_slice %34 {offsets = [0, 16], sizes = [16, 8], strides = [1, 1]} : vector<16x32xbf16> to vector<16x8xbf16>
    %82 = vector.extract_strided_slice %36 {offsets = [0, 16], sizes = [16, 8], strides = [1, 1]} : vector<16x32xbf16> to vector<16x8xbf16>
    %cst_33 = arith.constant dense<0.000000e+00> : vector<16x16xf32>
    %83 = tpu.matmul %81, %82, %cst_33 {dimension_numbers = #tpu.dot_dimension_numbers<[1], [1], [0], [0], [0, 0, 1, 0], [], []>} : vector<16x8xbf16>, vector<16x8xbf16>, vector<16x16xf32> -> vector<16x16xf32>
    %cst_34 = arith.constant -1.000000e+09 : f32
    %84 = vector.broadcast %cst_34 : f32 to vector<16x16xf32>
    %85 = arith.select %42, %83, %84 : vector<16x16xi1>, vector<16x16xf32>
    %cst_35 = arith.constant dense<0xFF800000> : vector<16xf32>
    %86 = vector.multi_reduction <maximumf>, %85, %cst_35 [1] : vector<16x16xf32> to vector<16xf32>
    %87 = vector.shape_cast %86 : vector<16xf32> to vector<16x1xf32>
    %88 = vector.broadcast %87 : vector<16x1xf32> to vector<16x16xf32>
    %89 = arith.subf %85, %88 : vector<16x16xf32>
    %90 = math.exp %89 : vector<16x16xf32>
    %cst_36 = arith.constant dense<0.000000e+00> : vector<16xf32>
    %91 = vector.multi_reduction <add>, %90, %cst_36 [1] : vector<16x16xf32> to vector<16xf32>
    %92 = vector.shape_cast %91 : vector<16xf32> to vector<16x1xf32>
    %93 = tpu.reciprocal %92 : vector<16x1xf32> -> vector<16x1xf32>
    %94 = vector.broadcast %93 : vector<16x1xf32> to vector<16x16xf32>
    %95 = arith.mulf %90, %94 : vector<16x16xf32>
    %96 = arith.truncf %95 : vector<16x16xf32> to vector<16x16xbf16>
    %97 = vector.extract_strided_slice %38 {offsets = [0, 16], sizes = [16, 8], strides = [1, 1]} : vector<16x32xbf16> to vector<16x8xbf16>
    %cst_37 = arith.constant dense<0.000000e+00> : vector<16x8xf32>
    %98 = tpu.matmul %96, %97, %cst_37 {dimension_numbers = #tpu.dot_dimension_numbers<[1], [0], [0], [1], [0, 0, 1, 1], [], []>} : vector<16x16xbf16>, vector<16x8xbf16>, vector<16x8xf32> -> vector<16x8xf32>
    %c0_38 = arith.constant 0 : index
    %c16 = arith.constant 16 : index
    %99 = vector.load %arg11[%c0_38, %c16] : memref<16x32xf32, #tpu.memory_space<vmem>>, vector<16x8xf32>
    tpu.vector_store %arg11[%c0_38, %c16], %98 {strides = array<i32>} : memref<16x32xf32, #tpu.memory_space<vmem>>, vector<16x8xf32>,
    %100 = vector.extract_strided_slice %34 {offsets = [0, 24], sizes = [16, 8], strides = [1, 1]} : vector<16x32xbf16> to vector<16x8xbf16>
    %101 = vector.extract_strided_slice %36 {offsets = [0, 24], sizes = [16, 8], strides = [1, 1]} : vector<16x32xbf16> to vector<16x8xbf16>
    %cst_39 = arith.constant dense<0.000000e+00> : vector<16x16xf32>
    %102 = tpu.matmul %100, %101, %cst_39 {dimension_numbers = #tpu.dot_dimension_numbers<[1], [1], [0], [0], [0, 0, 1, 0], [], []>} : vector<16x8xbf16>, vector<16x8xbf16>, vector<16x16xf32> -> vector<16x16xf32>
    %cst_40 = arith.constant -1.000000e+09 : f32
    %103 = vector.broadcast %cst_40 : f32 to vector<16x16xf32>
    %104 = arith.select %42, %102, %103 : vector<16x16xi1>, vector<16x16xf32>
    %cst_41 = arith.constant dense<0xFF800000> : vector<16xf32>
    %105 = vector.multi_reduction <maximumf>, %104, %cst_41 [1] : vector<16x16xf32> to vector<16xf32>
    %106 = vector.shape_cast %105 : vector<16xf32> to vector<16x1xf32>
    %107 = vector.broadcast %106 : vector<16x1xf32> to vector<16x16xf32>
    %108 = arith.subf %104, %107 : vector<16x16xf32>
    %109 = math.exp %108 : vector<16x16xf32>
    %cst_42 = arith.constant dense<0.000000e+00> : vector<16xf32>
    %110 = vector.multi_reduction <add>, %109, %cst_42 [1] : vector<16x16xf32> to vector<16xf32>
    %111 = vector.shape_cast %110 : vector<16xf32> to vector<16x1xf32>
    %112 = tpu.reciprocal %111 : vector<16x1xf32> -> vector<16x1xf32>
    %113 = vector.broadcast %112 : vector<16x1xf32> to vector<16x16xf32>
    %114 = arith.mulf %109, %113 : vector<16x16xf32>
    %115 = arith.truncf %114 : vector<16x16xf32> to vector<16x16xbf16>
    %116 = vector.extract_strided_slice %38 {offsets = [0, 24], sizes = [16, 8], strides = [1, 1]} : vector<16x32xbf16> to vector<16x8xbf16>
    %cst_43 = arith.constant dense<0.000000e+00> : vector<16x8xf32>
    %117 = tpu.matmul %115, %116, %cst_43 {dimension_numbers = #tpu.dot_dimension_numbers<[1], [0], [0], [1], [0, 0, 1, 1], [], []>} : vector<16x16xbf16>, vector<16x8xbf16>, vector<16x8xf32> -> vector<16x8xf32>
    %c0_44 = arith.constant 0 : index
    %c24 = arith.constant 24 : index
    %118 = vector.load %arg11[%c0_44, %c24] : memref<16x32xf32, #tpu.memory_space<vmem>>, vector<16x8xf32>
    tpu.vector_store %arg11[%c0_44, %c24], %117 {strides = array<i32>} : memref<16x32xf32, #tpu.memory_space<vmem>>, vector<16x8xf32>,
    %c0_45 = arith.constant 0 : index
    %c0_46 = arith.constant 0 : index
    %119 = vector.load %arg11[%c0_45, %c0_46] : memref<16x32xf32, #tpu.memory_space<vmem>>, vector<16x32xf32>
    %120 = arith.truncf %119 : vector<16x32xf32> to vector<16x32xbf16>
    %c0_47 = arith.constant 0 : index
    %c0_48 = arith.constant 0 : index
    %121 = vector.load %arg8[%c0_47, %c0_48] : memref<32x32xbf16, #tpu.memory_space<vmem>>, vector<32x32xbf16>
    %cst_49 = arith.constant dense<0.000000e+00> : vector<16x32xf32>
    %122 = tpu.matmul %120, %121, %cst_49 {dimension_numbers = #tpu.dot_dimension_numbers<[1], [0], [0], [1], [0, 0, 1, 1], [], []>} : vector<16x32xbf16>, vector<32x32xbf16>, vector<16x32xf32> -> vector<16x32xf32>
    %123 = arith.addf %1, %122 : vector<16x32xf32>
    %c0_50 = arith.constant 0 : index
    %c0_51 = arith.constant 0 : index
    %124 = vector.load %arg9[%c0_50, %c0_51] : memref<1x32xf32, #tpu.memory_space<vmem>>, vector<1x32xf32>
    %125 = vector.broadcast %124 : vector<1x32xf32> to vector<16x32xf32>
    %126 = arith.addf %123, %125 : vector<16x32xf32>
    %c0_52 = arith.constant 0 : index
    %c0_53 = arith.constant 0 : index
    %c0_54 = arith.constant 0 : index
    %127 = vector.load %arg10[%c0_52, %c0_53, %c0_54] : memref<1x16x32xf32, #tpu.memory_space<vmem>>, vector<1x16x32xf32>
    %128 = vector.shape_cast %127 : vector<1x16x32xf32> to vector<16x32xf32>
    %129 = vector.shape_cast %126 : vector<16x32xf32> to vector<1x16x32xf32>
    tpu.vector_store %arg10[%c0_52, %c0_53, %c0_54], %129 {strides = array<i32>} : memref<1x16x32xf32, #tpu.memory_space<vmem>>, vector<1x16x32xf32>,
    return
  }
  func.func @transform_0(%arg0: i32, %arg1: i32) -> (i32, i32, i32) {
    %c0_i32 = arith.constant 0 : i32
    %c0_i32_0 = arith.constant 0 : i32
    return %arg0, %arg1, %c0_i32 : i32, i32, i32
  }
  func.func @transform_1(%arg0: i32, %arg1: i32) -> (i32, i32, i32) {
    %c0_i32 = arith.constant 0 : i32
    %c0_i32_0 = arith.constant 0 : i32
    return %arg0, %arg1, %c0_i32 : i32, i32, i32
  }
  func.func @transform_2(%arg0: i32, %arg1: i32) -> (i32, i32) {
    %c0_i32 = arith.constant 0 : i32
    %c0_i32_0 = arith.constant 0 : i32
    %c0_i32_1 = arith.constant 0 : i32
    return %c0_i32, %c0_i32_0 : i32, i32
  }
  func.func @transform_3(%arg0: i32, %arg1: i32) -> (i32, i32) {
    %c0_i32 = arith.constant 0 : i32
    %c0_i32_0 = arith.constant 0 : i32
    %c0_i32_1 = arith.constant 0 : i32
    return %c0_i32, %c0_i32_0 : i32, i32
  }
  func.func @transform_4(%arg0: i32, %arg1: i32) -> (i32, i32) {
    %c0_i32 = arith.constant 0 : i32
    %c0_i32_0 = arith.constant 0 : i32
    %c0_i32_1 = arith.constant 0 : i32
    return %c0_i32, %c0_i32_0 : i32, i32
  }
  func.func @transform_5(%arg0: i32, %arg1: i32) -> (i32, i32) {
    %c0_i32 = arith.constant 0 : i32
    %c0_i32_0 = arith.constant 0 : i32
    %c0_i32_1 = arith.constant 0 : i32
    return %c0_i32, %c0_i32_0 : i32, i32
  }
  func.func @transform_6(%arg0: i32, %arg1: i32) -> (i32, i32) {
    %c0_i32 = arith.constant 0 : i32
    %c0_i32_0 = arith.constant 0 : i32
    %c0_i32_1 = arith.constant 0 : i32
    return %c0_i32, %c0_i32_0 : i32, i32
  }
  func.func @transform_7(%arg0: i32, %arg1: i32) -> (i32, i32) {
    %c0_i32 = arith.constant 0 : i32
    %c0_i32_0 = arith.constant 0 : i32
    %c0_i32_1 = arith.constant 0 : i32
    return %c0_i32, %c0_i32_0 : i32, i32
  }
  func.func @transform_8(%arg0: i32, %arg1: i32) -> (i32, i32, i32) {
    %c0_i32 = arith.constant 0 : i32
    %c0_i32_0 = arith.constant 0 : i32
    return %arg0, %arg1, %c0_i32 : i32, i32, i32
  }
}

</mosaic_0001>

<bundles_post_ra>
// kernel: tpu_custom_call.1
= control target key start
LH: loop header
LB: loop body
LE: loop exit
PB: predicated region body
PF: predicated region fallthrough
CT: control target
= control target key end

     0   :  { %s1997_s0 = inlined_call_operand.hbm [shape: f32[2,16,32], index: 0, kind: input, shape index: {}]   ;;  %s1998_s1 = inlined_call_operand.hbm [shape: f32[2,16,16], index: 1, kind: input, shape index: {}]   ;;  %s1999_s2 = inlined_call_operand.vmem [shape: f32[1,32], index: 2, kind: input, shape index: {}]   ;;  %s2000_s3 = inlined_call_operand.vmem [shape: f32[1,32], index: 3, kind: input, shape index: {}]   ;;  %s2001_s4 = inlined_call_operand.hbm [shape: bf16[32,96], index: 4, kind: input, shape index: {}]   ;;  %s2002_s5 = inlined_call_operand.vmem [shape: f32[1,96], index: 5, kind: input, shape index: {}]   ;;  %s2003_s6 = inlined_call_operand.hbm [shape: bf16[32,32], index: 6, kind: input, shape index: {}]   ;;  %s2004_s7 = inlined_call_operand.vmem [shape: f32[1,32], index: 7, kind: input, shape index: {}]   ;;  %s2005_s8 = inlined_call_operand.hbm [shape: f32[2,16,32], index: 8, kind: output, shape index: {}]  }
   0x1   :  { %2011 = sst [smem:[#allocation23_spill]] %s2001_s4 }
   0x2   :  { %2012 = sst [smem:[#allocation24_spill]] %s2003_s6 }
   0x3   :  { %13 = vsyncpa [#allocation4], 0 }
   0x4   :  { %15 = vsyncpa [#allocation4 + $0x1], 0 }
   0x5   :  { %16 = vsyncpa [#allocation7], 0 }
   0x6   :  { %18 = vsyncpa [#allocation7 + $0x1], 0 }
   0x7   :  { %19 = vsyncpa [#allocation10], 0 }
   0x8   :  { %20 = vsyncpa [#allocation5], 0 }
   0x9   :  { %22 = vsyncpa [#allocation5 + $0x1], 0  ;;  %s1687_s27 = smov 0   ;;  %s1689_s28 = smov 0  }
   0xa   :  { %s1691_s29 = smov 0   ;;  %s1693_s30 = smov 0  }
   0xb   :  { %s1695_s9 = smov 0   ;;  %s1697_s10 = smov 0  }
   0xc LB: > { %2013 = sst [smem:[#allocation17_spill]] %s1598_s27  ;;  %s1718_s11 = sadd.s32 4294967295, %s1618_s10   ;;  %s1618_s10 = sphi %s1697_s10, %s28_s10   ;;  %s1614_s9 = sphi %s1695_s9, %s2031_s9   ;;  %s1610_s30 = sphi %s1693_s30, %s2030_s30   ;;  %s1606_s29 = sphi %s1691_s29, %s2029_s29   ;;  %s1602_s28 = sphi %s1689_s28, %s2033_s28   ;;  %s1598_s27 = sphi %s1687_s27, %s2032_s27  }
   0xd   : > { %2014 = sst [smem:[#allocation18_spill]] %s1606_s29  ;;  %s1195_s12 = sadd.s32 4294967294, %s1618_s10  }
   0xe   : > { %2015 = sst [smem:[#allocation19_spill]] %s1614_s9  ;;  %p62_p0 = scmp.ne.s32.totalorder %s1602_s28, %s1598_s27 }
   0xf   : > { %p63_p1 = scmp.eq.s32.totalorder %s1718_s11, 0  ;;  %p242_p2 = scmp.eq.s32.totalorder %s1718_s11, 1 }
  0x10   : > { %p248_p3 = scmp.eq.s32.totalorder %s1195_s12, 1  ;;  %p1196_p5 = scmp.ge.s32.totalorder %s1618_s10, 1 }
  0x11   : > { %p1727_p4 = por %p63_p1, %p62_p0  ;;  %p255_p7 = scmp.lt.s32.totalorder %s1618_s10, 3 }
  0x12   : > { %p1732_p6 = por %p248_p3, %p62_p0  ;;  %s2019_s4 = sld [smem:[#allocation23_spill]] }
  0x13   : > { %p1740_p8 = pnand %p1196_p5, %p255_p7  ;;  %s1620_s19 = smov [#allocation8]  }
  0x14   : > { %s2017_s14 = scalar_select %p1732_p6, 1, 0 }
  0x15   : > { %p1264_p9 = pneg %p1740_p8  ;;  %s274_s20 = sshll.u32 %s1620_s19, 4  ;;  %s275_s20 = int_to_ptr.vmem [resolvable:$true] %s274_s20 }
  0x16   : > { %2018 = sst [smem:[#allocation20_spill]] %s2017_s14  ;;  %p1199_p11 = scmp.ge.s32.totalorder %s1618_s10, 2 }
  0x17   : > { %p1265_p10 = pnand %p1264_p9, %p63_p1  ;;  %s2021_s6 = sld [smem:[#allocation24_spill]] }
  0x18   : > { %s272_s17 = sshll.u32 %s2019_s4, 4  ;;  %s1621_s24 = smov 64   ;;  %s273_s17 = int_to_ptr.hbm [resolvable:$true] %s272_s17 }
  0x19   : > { %s1622_s25 = smov 4   ;;  %s1623_s26 = smov [#allocation9]  }
  0x1a   : > { %1267 = dma.hbm_to_vmem [thread:$0]  (!%p1265_p10), %s273_s17, 256, %s275_s20, [#allocation7], %s1621_s24, %s1621_s24, %s1622_s25  }
  0x1b   : > { %s291_s12 = sshll.u32 %s1623_s26, 4  ;;  %s40_s15 = sadd.s32 1, %s1614_s9  ;;  %s292_s12 = int_to_ptr.vmem [resolvable:$true] %s291_s12 }
  0x1c   : > { %s49_s16 = sadd.s32 1, %s1606_s29  ;;  %p42_p12 = scmp.ge.s32.totalorder %s40_s15, 2 }
  0x1d   : > { %s289_s23 = sshll.u32 %s2021_s6, 4  ;;  %p56_p13 = scmp.ne.s32.totalorder %s1606_s29, %s1602_s28  ;;  %s290_s23 = int_to_ptr.hbm [resolvable:$true] %s289_s23 }
  0x1e   : > { %1270 = dma.hbm_to_vmem [thread:$0]  (!%p1265_p10), %s290_s23, 256, %s292_s12, [#allocation10], %s1621_s24, %s1621_s24, %s1622_s25  }
  0x1f   : > { %p57_p0 = scmp.eq.s32.totalorder %s1618_s10, 0  ;;  %p1284_p3 = scmp.lt.s32.totalorder %s1618_s10, 2 }
  0x20   : > { %s2035_s15 = smov (%p42_p12, %s40_s15), 0  ;;  %p1766_p7 = por %p242_p2, %p56_p13 }
  0x21   : > { %2022 = sst [smem:[#allocation21_spill]] %s2035_s15  ;;  %p1760_p5 = por %p57_p0, %p56_p13 }
  0x22   : > { %s44_s20 = ssub.s32 %s1614_s9, %s2035_s15  ;;  %s308_s21 = sand.u32 1, %s1606_s29  }
  0x23   : > { %p47_p9 = scmp.eq.s32.totalorder %s44_s20, 0  ;;  %s1200_s22 = sshll.u32 %s308_s21, 4 }
  0x24   : > { %s1243_s23 = sshll.u32 %s1614_s9, 4  ;;  %s312_s6 = scalar_lea.vmem [#allocation3], %s1200_s22 }
  0x25   : > { %s1775_s24 = scalar_select %p47_p9, %s1606_s29, %s49_s16  }
  0x26   : > { %s319_s12 = scalar_lea.hbm %s1997_s0, %s1243_s23  ;;  %s322_s14 = sshll.u32 %s312_s6, 4  ;;  %s323_s14 = int_to_ptr.vmem [resolvable:$true] %s322_s14 }
  0x27   : > { %2025 = sst [smem:[#allocation22_spill]] %s1775_s24  ;;  %s320_s4 = sshll.u32 %s319_s12, 4  ;;  %s321_s4 = int_to_ptr.hbm [resolvable:$true] %s320_s4 }
  0x28   : > { %p1272_p2 = pnand %p1284_p3, %p1760_p5  ;;  %s343_s20 = scalar_lea.hbm %s1998_s1, %s1243_s23 }
  0x29   : > { %s309_s9 = scalar_lea.sflag [#allocation4], %s308_s21  ;;  %s1624_s16 = smov 128  }
  0x2a   : > { %s1625_s24 = smov 8   ;;  %s344_s29 = sshll.u32 %s343_s20, 4  ;;  %s345_s29 = int_to_ptr.hbm [resolvable:$true] %s344_s29 }
  0x2b   : > { %1274 = dma.hbm_to_vmem [thread:$0]  (!%p1272_p2), %s321_s4, 256, %s323_s14, %s309_s9, %s1624_s16, %s1624_s16, %s1625_s24  }
  0x2c   : > { %s336_s25 = scalar_lea.vmem [#allocation6], %s1200_s22  ;;  %s332_s12 = sand.u32 1, %s1618_s10  }
  0x2d   : > { %s346_s26 = sshll.u32 %s336_s25, 4  ;;  %s333_s6 = scalar_lea.sflag [#allocation7], %s332_s12  ;;  %s347_s26 = int_to_ptr.vmem [resolvable:$true] %s346_s26 }
  0x2e   : > { %1277 = dma.hbm_to_vmem [thread:$0]  (!%p1272_p2), %s345_s29, 256, %s347_s26, %s333_s6, %s1624_s16, %s1624_s16, %s1625_s24  }
  0x2f   : > { %358 = sbr.rel (%p1740_p8) target bundleno = 1489 (0x5d1), region = 52  ;;  %s1791_s19 = sand.u32 (!%p1740_p8), 1, %s1602_s28  }
  0x30   : > { %s1794_s27 = sshll.u32 (!%p1740_p8), %s1791_s19, 4  ;;  %s361_s4 = scalar_lea.sflag (!%p1740_p8), [#allocation4], %s1791_s19 }
  0x31   : > { %s364_s9 = scalar_lea.vmem (!%p1740_p8), [#allocation3], %s1794_s27 }
  0x34   : > { %1577 = dma.done.wait (%p1727_p4), %s361_s4, 256  }
  0x35   : > { %1579 = vsyncadd (%p1727_p4), %s361_s4, 4294967040  ;;  %s370_s29 = sand.u32 1, %s1718_s11   ;;  %s374_s18 = scalar_lea.vmem [#allocation6], %s1794_s27 }
  0x36   : > { %s371_s14 = scalar_lea.sflag [#allocation7], %s370_s29 }
  0x37   : > { %1581 = dma.done.wait (%p1727_p4), %s371_s14, 256  }
  0x38   : > { %1583 = vsyncadd (%p1727_p4), %s371_s14, 4294967040 }
  0x39   : > { %1585 = dma.done.wait (%p63_p1), [#allocation7], 256  }
  0x3a   : > { %1587 = vsyncadd (%p63_p1), [#allocation7], 4294967040 }
  0x3b   : > { %1589 = dma.done.wait (%p63_p1), [#allocation10], 256  }
  0x3c   : > { %1591 = vsyncadd (%p63_p1), [#allocation10], 4294967040  ;;  %vm431_vm0 = vcmask 261120   ;;  %v1816_v0 = vld [vmem:[%s364_s9] sm:$0xff]  ;;  %v1820_v2 = vld [vmem:[%s364_s9 + $0x8] sm:$0xff]  ;;  %v1626_v4 = vmov 32.0  }
  0x3d   : > { %v432_v1 = vsel %vm431_vm0, %v1816_v0, 0.0  ;;  %v435_v3 = vsel %vm431_vm0, %v1820_v2, 0.0  ;;  %1362 = vrcp.f32 %v1626_v4  ;;  %v1246_v21 = vld [vmem:[#allocation8 + $0x8] sm:$0xff]  ;;  %v1245_v23 = vld [vmem:[#allocation8] sm:$0xff]  ;;  %s1627_s24 = smov 72   ;;  %s1628_s20 = smov 96  }
  0x3e   : > { %433 = vadd.xlane.f32.xlu0 %v432_v1  ;;  %555 = vmatpush.bf16.msra.mxu0 %v1246_v21  ;;  %s1629_s16 = smov 120   ;;  %s1630_s25 = smov 88   ;;  %vm585_vm14 = vcmask 64512  }
  0x3f   : > { %s1631_s26 = smov 104   ;;  %s1632_s12 = smov 80  }
  0x40   : > { %s1633_s6 = smov 112   ;;  %s1634_s4 = smov 64  }
  0x41   : > { %s1635_s9 = smov 56   ;;  %s1636_s29 = smov 40  }
  0x42   : > { %556 = vmatpush.bf16.msra.mxu0 %v1245_v23  ;;  %s1637_s14 = smov 48   ;;  %s1639_s11 = smov 16  }
  0x43   : > { %v1363_v5 = vpop.eup %1362  ;;  %s1640_s13 = smov 24   ;;  %s1249_s22 = sshll.u32 %s1610_s30, 4 }
  0x44   : > { %v439_v6 = vmul.f32 32.0, %v1363_v5  ;;  %vm443_vm1 = vweird.f32 %v1363_v5  ;;  %s422_s23 = scalar_lea.vmem [#allocation11], %s1794_s27  ;;  %s1045_s30 = scalar_lea.sflag [#allocation5], %s1791_s19 }
  0x46   : > { %436 = vadd.xlane.f32.xlu0 %v435_v3  ;;  %v440_v7 = vsub.f32 1.0, %v439_v6 }
  0x48   : > { %v441_v8 = vmul.f32 %v1363_v5, %v440_v7 }
  0x4a   : > { %v442_v9 = vadd.f32 %v1363_v5, %v441_v8 }
  0x4c   : > { %v444_v10 = vsel %vm443_vm1, %v1363_v5, %v442_v9  ;;  %v1358_v5 = vld [vmem:[%s1999_s2] ss:$0 sm:$0xff]  ;;  %vm608_vm1 = vcmask 130048  }
  0xb1   : > { %v434_v11 = vpop.xlane.xlu0 %433 }
  0xb2   : > { %v445_v12 = vmul.f32 %v444_v10, %v434_v11  ;;  %v1359_v11 = vld [vmem:[%s2000_s3] ss:$0 sm:$0xff] }
  0xb4   : > { %v1825_v13 = vsub.f32 %v1816_v0, %v445_v12 }
  0xb6   : > { %v449_v14 = vmul.f32 %v1825_v13, %v1825_v13 }
  0xb8   : > { %v451_v15 = vsel %vm431_vm0, %v449_v14, 0.0 }
  0xb9   : > { %452 = vadd.xlane.f32.xlu1 %v451_v15  ;;  %v437_v16 = vpop.xlane.xlu0 %436 }
  0xba   : > { %v446_v17 = vmul.f32 %v444_v10, %v437_v16  ;;  %v1360_v16 = vld [vmem:[%s2002_s5] ss:$0 sm:$0xff] }
  0xbc   : > { %v1831_v18 = vsub.f32 %v1820_v2, %v446_v17 }
  0xbe   : > { %v450_v19 = vmul.f32 %v1831_v18, %v1831_v18 }
  0xc0   : > { %v454_v20 = vsel %vm431_vm0, %v450_v19, 0.0 }
  0xc1   : > { %455 = vadd.xlane.f32.xlu1 %v454_v20 }
 0x12c   : > { %v453_v22 = vpop.xlane.xlu1 %452 }
 0x12d   : > { %v457_v24 = vmul.f32 0.032258064, %v453_v22 }
 0x12f   : > { %1364 = vrsqrt.f32 %v457_v24  ;;  %vm466_vm2 = vcmp.eq.f32.partialorder %v457_v24, inf  ;;  %v469_v37 = vand.u32 2147483648, %v457_v24  ;;  %vm468_vm3 = vcmp.eq.f32.partialorder %v457_v24, 0.0 }
 0x134   : > { %v456_v25 = vpop.xlane.xlu1 %455 }
 0x135   : > { %v1365_v26 = vpop.eup %1364  ;;  %v458_v27 = vmul.f32 0.032258064, %v456_v25 }
 0x136   : > { %v460_v28 = vmul.f32 %v1365_v26, %v457_v24 }
 0x137   : > { %1366 = vrsqrt.f32 %v458_v27  ;;  %vm478_vm4 = vcmp.eq.f32.partialorder %v458_v27, inf  ;;  %v481_v45 = vand.u32 2147483648, %v458_v27  ;;  %vm480_vm5 = vcmp.eq.f32.partialorder %v458_v27, 0.0 }
 0x138   : > { %v461_v29 = vmul.f32 %v1365_v26, %v460_v28 }
 0x13a   : > { %v462_v30 = vmul.f32 0.5, %v461_v29 }
 0x13c   : > { %v463_v31 = vsub.f32 1.5, %v462_v30 }
 0x13d   : > { %v1367_v32 = vpop.eup %1366 }
 0x13e   : > { %v464_v33 = vmul.f32 %v1365_v26, %v463_v31  ;;  %v472_v34 = vmul.f32 %v1367_v32, %v458_v27 }
 0x140   : > { %v465_v35 = vmul.f32 %v464_v33, %v457_v24  ;;  %v473_v36 = vmul.f32 %v1367_v32, %v472_v34 }
 0x142   : > { %v467_v38 = vsel %vm466_vm2, %v457_v24, %v465_v35  ;;  %v474_v39 = vmul.f32 0.5, %v473_v36 }
 0x143   : > { %v470_v40 = vsel %vm468_vm3, %v469_v37, %v467_v38 }
 0x144   : > { %v475_v41 = vsub.f32 1.5, %v474_v39  ;;  %v483_v42 = vadd.f32 1e-06, %v470_v40 }
 0x146   : > { %v476_v43 = vmul.f32 %v1367_v32, %v475_v41  ;;  %1368 = vrcp.f32 %v483_v42  ;;  %v496_v53 = vand.u32 2147483648, %v483_v42  ;;  %vm490_vm7 = vweird.f32 %v483_v42 }
 0x147   : > { %v494_v55 = vand.u32 2147483647, %v483_v42 }
 0x148   : > { %v477_v44 = vmul.f32 %v476_v43, %v458_v27  ;;  %v497_v59 = vor.u32 1.1754944e-38, %v496_v53 }
 0x149   : > { %vm495_vm9 = vcmp.eq.f32.partialorder %v494_v55, 8.507059e+37 }
 0x14a   : > { %v479_v46 = vsel %vm478_vm4, %v458_v27, %v477_v44  ;;  %v569_v44 = vld [vmem:[%s374_s18] sm:$0xff] }
 0x14b   : > { %v482_v47 = vsel %vm480_vm5, %v481_v45, %v479_v46  ;;  %vm571_vm15 = vcmp.gt.f32.partialorder %v569_v44, 0.0 }
 0x14c   : > { %v1369_v48 = vpop.eup %1368  ;;  %v484_v49 = vadd.f32 1e-06, %v482_v47 }
 0x14d   : > { %v486_v50 = vmul.f32 %v1369_v48, %v483_v42  ;;  %vm491_vm6 = vweird.f32 %v1369_v48 }
 0x14e   : > { %1370 = vrcp.f32 %v484_v49  ;;  %vm492_vm8 = vmor %vm490_vm7, %vm491_vm6  ;;  %v510_v62 = vand.u32 2147483648, %v484_v49  ;;  %v508_v1 = vand.u32 2147483647, %v484_v49  ;;  %vm504_vm11 = vweird.f32 %v484_v49 }
 0x14f   : > { %v487_v51 = vsub.f32 1.0, %v486_v50 }
 0x150   : > { %v511_v6 = vor.u32 1.1754944e-38, %v510_v62  ;;  %vm509_vm13 = vcmp.eq.f32.partialorder %v508_v1, 8.507059e+37 }
 0x151   : > { %v488_v52 = vmul.f32 %v1369_v48, %v487_v51 }
 0x153   : > { %v489_v54 = vadd.f32 %v1369_v48, %v488_v52 }
 0x154   : > { %v1371_v56 = vpop.eup %1370 }
 0x155   : > { %v493_v57 = vsel %vm492_vm8, %v1369_v48, %v489_v54  ;;  %v500_v58 = vmul.f32 %v1371_v56, %v484_v49  ;;  %vm505_vm10 = vweird.f32 %v1371_v56  ;;  %v570_v48 = vld [vmem:[%s374_s18 + $0x8] sm:$0xff]  ;;  %s1638_s18 = smov 8  }
 0x156   : > { %v498_v61 = vsel %vm495_vm9, %v497_v59, %v493_v57  ;;  %vm506_vm12 = vmor %vm504_vm11, %vm505_vm10  ;;  %vm572_vm2 = vcmp.gt.f32.partialorder %v570_v48, 0.0 }
 0x157   : > { %v501_v60 = vsub.f32 1.0, %v500_v58  ;;  %v513_v4 = vmul.f32 %v498_v61, %v1825_v13 }
 0x159   : > { %v502_v63 = vmul.f32 %v1371_v56, %v501_v60  ;;  %v518_v10 = vmul.f32 %v1358_v5, %v513_v4 }
 0x15b   : > { %v503_v3 = vadd.f32 %v1371_v56, %v502_v63  ;;  %v523_v14 = vadd.f32 %v1359_v11, %v518_v10 }
 0x15d   : > { %v507_v7 = vsel %vm506_vm12, %v1371_v56, %v503_v3 }
 0x15e   : > { %v512_v8 = vsel %vm509_vm13, %v511_v6, %v507_v7 }
 0x15f   : > { %v514_v9 = vmul.f32 %v512_v8, %v1831_v18 }
 0x161   : > { %v519_v12 = vmul.f32 %v1358_v5, %v514_v9 }
 0x163   : > { %v524_v15 = vadd.f32 %v1359_v11, %v519_v12 }
 0x165   : > { %v525_v13 = vpack.c.bf16 %v524_v15, %v523_v14 }
 0x167   : > { %1220 = vmatmul.msk.bf16.vlgmr.msra.gmra.mxu0 %vm431_vm0, %v525_v13 }
 0x1e4   : > { %v558_v17 = vpop.f32.mrf.mxu0 }
 0x1e5   : > { %v559_v19 = vadd.f32 %v1360_v16, %v558_v17 }
 0x1e7   : > { %v563_v20 = vmul.f32 0.35355338, %v559_v19  ;;  %v567_v18 = vpack.c.bf16 %v559_v19, %v559_v19 }
 0x1e9   : > { %v565_v23 = vpack.c.bf16 %v563_v20, %v563_v20  ;;  %v580_v26 = vunpack.c.l.b16 %v567_v18 }
 0x1eb   : > { %v575_v29 = vunpack.c.l.b16 %v565_v23 }
 0x1ec   : > { %v560_v21 = vpop.f32.mrf.mxu0 }
 0x1ed   : > { %v561_v22 = vadd.f32 %v1360_v16, %v560_v21 }
 0x1ef   : > { %v564_v24 = vmul.f32 0.35355338, %v561_v22  ;;  %v568_v25 = vpack.c.bf16 %v561_v22, %v561_v22 }
 0x1f1   : > { %v566_v27 = vpack.c.bf16 %v564_v24, %v564_v24  ;;  %v581_v28 = vunpack.c.l.b16 %v568_v25 }
 0x1f3   : > { %v576_v30 = vunpack.c.l.b16 %v566_v27  ;;  %v1848_v31 = vpack.c.b16 %v581_v28, %v580_v26 }
 0x1f5   : > { %v577_v32 = vpack.c.b16 %v576_v30, %v575_v29  ;;  %894 = vrot.lane.b32.xlu1 %v1848_v31, %s1627_s24  ;;  %583 = vrot.lane.b32.xlu2 %v1848_v31, %s1628_s20 }
 0x1f7   : > { %680 = vrot.lane.b32.xlu0 %v577_v32, %s1629_s16  ;;  %s1058_s16 = scalar_lea.hbm %s2005_s8, %s1249_s22 }
 0x1fd   : > { %682 = vrot.lane.b32.xlu2 %v1848_v31, %s1630_s25  ;;  %s1059_s25 = sshll.u32 %s422_s23, 4  ;;  %s1060_s25 = int_to_ptr.vmem [resolvable:$true] %s1059_s25 }
 0x205   : > { %892 = vrot.lane.b32.xlu2 %v577_v32, %s1631_s26  ;;  %s1061_s26 = sshll.u32 %s1058_s16, 4  ;;  %s1062_s26 = int_to_ptr.hbm [resolvable:$true] %s1061_s26 }
 0x20d   : > { %788 = vrot.lane.b32.xlu2 %v1848_v31, %s1632_s12  ;;  %s1538_s12 = sshra.s32 %s1062_s26, 4  ;;  %s1539_s12 = int_to_ptr.hbm [resolvable:$true] %s1538_s12 }
 0x20e   : > { %s1540_s27 = scalar_lea.hbm %s1539_s12, 16  ;;  %p1545_p10 = scmp.lt.s32.totalorder %s1539_s12, %s2005_s8 }
 0x20f   : > { %p1541_p1 = scmp.ne.s32.totalorder %s1539_s12, %s1540_s27 }
 0x211   : > { %p1542_p4 = pnand %p1541_p1, %p1766_p7 }
 0x213   : > { %p1543_p8 = pneg %p1542_p4 }
 0x215   : > { %786 = vrot.lane.b32.xlu2 %v577_v32, %s1633_s6 }
 0x24f   : > { %v584_v33 = vpop.permute.xlu2 %583 }
 0x250   : > { %v590_v34 = vsel %vm585_vm14, %v584_v33, 0 }
 0x251   : > { %599 = vmatpush.bf16.xpose.msra.mxu1 %v590_v34 }
 0x257   : > { %v683_v35 = vpop.permute.xlu2 %682 }
 0x258   : > { %1221 = vmatmul.msk.bf16.vlgmr.msra.gmra.mxu1 %vm585_vm14, %v577_v32  ;;  %v688_v36 = vsel %vm585_vm14, %v683_v35, 0 }
 0x259   : > { %697 = vmatpush.bf16.xpose.msra.mxu3 %v688_v36 }
 0x25f   : > { %v893_v37 = vpop.permute.xlu2 %892 }
 0x267   : > { %v895_v38 = vpop.permute.xlu1 %894  ;;  %v789_v39 = vpop.permute.xlu2 %788 }
 0x268   : > { %v794_v40 = vsel %vm585_vm14, %v789_v39, 0  ;;  %v900_v41 = vsel %vm585_vm14, %v895_v38, 0 }
 0x269   : > { %803 = vmatpush.bf16.xpose.msrb.mxu0 %v794_v40  ;;  %909 = vmatpush.bf16.xpose.msrb.mxu3 %v900_v41  ;;  %v681_v42 = vpop.permute.xlu0 %680 }
 0x26a   : > { %1223 = vmatmul.msk.bf16.vlgmr.msra.gmra.mxu3 %vm585_vm14, %v681_v42 }
 0x26f   : > { %v787_v43 = vpop.permute.xlu2 %786 }
 0x270   : > { %1225 = vmatmul.msk.bf16.vlgmr.msrb.gmra.mxu0 %vm585_vm14, %v787_v43 }
 0x27a   : > { %1227 = vmatmul.msk.bf16.vlgmr.msrb.gmra.mxu3 %vm585_vm14, %v893_v37 }
 0x2d5   : > { %v601_v45 = vpop.f32.mrf.mxu1 }
 0x2d6   : > { %v606_v46 = vsel %vm571_vm15, %v601_v45, -1e+09 }
 0x2d7   : > { %v609_v47 = vsel %vm608_vm1, %v606_v46, -inf }
 0x2d8   : > { %610 = vmax.xlane.f32.xlu0 %v609_v47 }
 0x2dd   : > { %v603_v49 = vpop.f32.mrf.mxu1 }
 0x2de   : > { %v607_v50 = vsel %vm572_vm2, %v603_v49, -1e+09 }
 0x2df   : > { %v612_v51 = vsel %vm608_vm1, %v607_v50, -inf }
 0x2e0   : > { %613 = vmax.xlane.f32.xlu2 %v612_v51 }
 0x2ed   : > { %v699_v52 = vpop.f32.mrf.mxu3  ;;  %v805_v53 = vpop.f32.mrf.mxu0 }
 0x2ee   : > { %v704_v54 = vsel %vm571_vm15, %v699_v52, -1e+09  ;;  %v810_v62 = vsel %vm571_vm15, %v805_v53, -1e+09 }
 0x2ef   : > { %v706_v55 = vsel %vm608_vm1, %v704_v54, -inf  ;;  %v812_v3 = vsel %vm608_vm1, %v810_v62, -inf }
 0x2f0   : > { %707 = vmax.xlane.f32.xlu1 %v706_v55 }
 0x2f5   : > { %v701_v56 = vpop.f32.mrf.mxu3  ;;  %v807_v57 = vpop.f32.mrf.mxu0 }
 0x2f6   : > { %v705_v58 = vsel %vm572_vm2, %v701_v56, -1e+09  ;;  %v1874_v59 = vsel %vm572_vm2, %v807_v57, -1e+09 }
 0x2f7   : > { %v709_v60 = vsel %vm608_vm1, %v705_v58, -inf  ;;  %v815_v61 = vsel %vm608_vm1, %v1874_v59, -inf }
 0x2f8   : > { %710 = vmax.xlane.f32.xlu0 %v709_v60  ;;  %816 = vmax.xlane.f32.xlu2 %v815_v61 }
 0x2fd   : > { %v911_v63 = vpop.f32.mrf.mxu3 }
 0x2fe   : > { %v1881_v1 = vsel %vm571_vm15, %v911_v63, -1e+09 }
 0x2ff   : > { %v918_v4 = vsel %vm608_vm1, %v1881_v1, -inf }
 0x300   : > { %813 = vmax.xlane.f32.xlu0 %v812_v3  ;;  %919 = vmax.xlane.f32.xlu2 %v918_v4 }
 0x305   : > { %v913_v5 = vpop.f32.mrf.mxu3 }
 0x306   : > { %v917_v6 = vsel %vm572_vm2, %v913_v5, -1e+09 }
 0x307   : > { %v921_v7 = vsel %vm608_vm1, %v917_v6, -inf }
 0x308   : > { %922 = vmax.xlane.f32.xlu1 %v921_v7 }
 0x34b   : > { %v611_v8 = vpop.xlane.xlu0 %610 }
 0x34c   : > { %v615_v9 = vsub.f32 %v606_v46, %v611_v8 }
 0x34e   : > { %v617_v10 = vmul.f32 1.442695, %v615_v9 }
 0x350   : > { %1372 = vpow2.f32 %v617_v10 }
 0x353   : > { %v614_v11 = vpop.xlane.xlu2 %613 }
 0x354   : > { %v616_v12 = vsub.f32 %v607_v50, %v614_v11 }
 0x356   : > { %v1888_v14 = vpop.eup %1372  ;;  %v619_v15 = vmul.f32 1.442695, %v616_v12 }
 0x357   : > { %v621_v13 = vsel %vm608_vm1, %v1888_v14, 0.0 }
 0x358   : > { %1374 = vpow2.f32 %v619_v15  ;;  %622 = vadd.xlane.f32.xlu1 %v621_v13 }
 0x35e   : > { %v1892_v16 = vpop.eup %1374 }
 0x35f   : > { %v624_v17 = vsel %vm608_vm1, %v1892_v16, 0.0 }
 0x360   : > { %625 = vadd.xlane.f32.xlu0 %v624_v17 }
 0x363   : > { %v708_v19 = vpop.xlane.xlu1 %707 }
 0x364   : > { %v712_v20 = vsub.f32 %v704_v54, %v708_v19 }
 0x366   : > { %v714_v21 = vmul.f32 1.442695, %v712_v20 }
 0x368   : > { %1376 = vpow2.f32 %v714_v21 }
 0x36b   : > { %v711_v18 = vpop.xlane.xlu0 %710  ;;  %v817_v37 = vpop.xlane.xlu2 %816 }
 0x36c   : > { %v713_v26 = vsub.f32 %v705_v58, %v711_v18  ;;  %v819_v39 = vsub.f32 %v1874_v59, %v817_v37 }
 0x36e   : > { %v1896_v22 = vpop.eup %1376  ;;  %v716_v28 = vmul.f32 1.442695, %v713_v26  ;;  %v822_v41 = vmul.f32 1.442695, %v819_v39 }
 0x36f   : > { %v718_v23 = vsel %vm608_vm1, %v1896_v22, 0.0 }
 0x370   : > { %719 = vadd.xlane.f32.xlu2 %v718_v23 }
 0x373   : > { %v814_v24 = vpop.xlane.xlu0 %813  ;;  %v920_v43 = vpop.xlane.xlu2 %919 }
 0x374   : > { %v818_v25 = vsub.f32 %v810_v62, %v814_v24  ;;  %658 = vrot.lane.b32.xlu0 %v1848_v31, %s1634_s4  ;;  %v924_v45 = vsub.f32 %v1881_v1, %v920_v43 }
 0x376   : > { %v820_v27 = vmul.f32 1.442695, %v818_v25  ;;  %v926_v46 = vmul.f32 1.442695, %v924_v45 }
 0x378   : > { %1378 = vpow2.f32 %v820_v27 }
 0x379   : > { %1380 = vpow2.f32 %v716_v28 }
 0x37b   : > { %v923_v29 = vpop.xlane.xlu1 %922 }
 0x37c   : > { %v925_v32 = vsub.f32 %v917_v6, %v923_v29 }
 0x37e   : > { %v1901_v30 = vpop.eup %1378  ;;  %v928_v34 = vmul.f32 1.442695, %v925_v32 }
 0x37f   : > { %v824_v33 = vsel %vm608_vm1, %v1901_v30, 0.0  ;;  %v1905_v35 = vpop.eup %1380 }
 0x380   : > { %825 = vadd.xlane.f32.xlu1 %v824_v33  ;;  %1382 = vpow2.f32 %v928_v34  ;;  %v721_v36 = vsel %vm608_vm1, %v1905_v35, 0.0 }
 0x381   : > { %1384 = vpow2.f32 %v822_v41 }
 0x382   : > { %1386 = vpow2.f32 %v926_v46 }
 0x386   : > { %v1910_v38 = vpop.eup %1382 }
 0x387   : > { %v933_v40 = vsel %vm608_vm1, %v1910_v38, 0.0  ;;  %v1915_v42 = vpop.eup %1384 }
 0x388   : > { %722 = vadd.xlane.f32.xlu1 %v721_v36  ;;  %755 = vrot.lane.b32.xlu2 %v1848_v31, %s1635_s9  ;;  %v827_v44 = vsel %vm608_vm1, %v1915_v42, 0.0  ;;  %v1921_v47 = vpop.eup %1386  ;;  %s1544_s9 = scalar_lea.hbm %s2005_s8, 32 }
 0x389   : > { %v930_v48 = vsel %vm608_vm1, %v1921_v47, 0.0  ;;  %p1546_p12 = scmp.lt.s32.totalorder %s1544_s9, %s1540_s27 }
 0x38b   : > { %p1547_p13 = por %p1546_p12, %p1545_p10 }
 0x38d   : > { %p1548_p0 = pnand %p1547_p13, %p1543_p8 }
 0x390   : > { %934 = vadd.xlane.f32.xlu1 %v933_v40 }
 0x39e   : > { %828 = vadd.xlane.f32.xlu0 %v827_v44 }
 0x3a9   : > { %967 = vrot.lane.b32.xlu1 %v1848_v31, %s1636_s29 }
 0x3b1   : > { %931 = vadd.xlane.f32.xlu2 %v930_v48 }
 0x3c9   : > { %861 = vrot.lane.b32.xlu2 %v1848_v31, %s1637_s14 }
 0x3cb   : > { %v623_v49 = vpop.xlane.xlu1 %622 }
 0x3cc   : > { %1388 = vrcp.f32 %v623_v49  ;;  %v638_v58 = vand.u32 2147483648, %v623_v49  ;;  %vm632_vm4 = vweird.f32 %v623_v49  ;;  %v636_v60 = vand.u32 2147483647, %v623_v49 }
 0x3ce   : > { %v639_v1 = vor.u32 1.1754944e-38, %v638_v58  ;;  %vm637_vm8 = vcmp.eq.f32.partialorder %v636_v60, 8.507059e+37 }
 0x3d2   : > { %v1389_v50 = vpop.eup %1388 }
 0x3d3   : > { %v628_v51 = vmul.f32 %v1389_v50, %v623_v49  ;;  %v626_v52 = vpop.xlane.xlu0 %625  ;;  %vm633_vm3 = vweird.f32 %v1389_v50 }
 0x3d4   : > { %1390 = vrcp.f32 %v626_v52  ;;  %vm634_vm5 = vmor %vm632_vm4, %vm633_vm3  ;;  %v652_v31 = vand.u32 2147483648, %v626_v52  ;;  %v650_v62 = vand.u32 2147483647, %v626_v52  ;;  %vm646_vm7 = vweird.f32 %v626_v52 }
 0x3d5   : > { %v629_v53 = vsub.f32 1.0, %v628_v51 }
 0x3d6   : > { %v653_v4 = vor.u32 1.1754944e-38, %v652_v31  ;;  %vm651_vm10 = vcmp.eq.f32.partialorder %v650_v62, 8.507059e+37 }
 0x3d7   : > { %v630_v54 = vmul.f32 %v1389_v50, %v629_v53 }
 0x3d9   : > { %v631_v57 = vadd.f32 %v1389_v50, %v630_v54 }
 0x3da   : > { %v1391_v55 = vpop.eup %1390 }
 0x3db   : > { %v642_v56 = vmul.f32 %v1391_v55, %v626_v52  ;;  %vm647_vm6 = vweird.f32 %v1391_v55  ;;  %v635_v63 = vsel %vm634_vm5, %v1389_v50, %v631_v57 }
 0x3dc   : > { %vm648_vm9 = vmor %vm646_vm7, %vm647_vm6  ;;  %v640_v6 = vsel %vm637_vm8, %v639_v1, %v635_v63 }
 0x3dd   : > { %v643_v59 = vsub.f32 1.0, %v642_v56  ;;  %v655_v10 = vmul.f32 %v1888_v14, %v640_v6 }
 0x3df   : > { %v644_v61 = vmul.f32 %v1391_v55, %v643_v59 }
 0x3e1   : > { %v645_v3 = vadd.f32 %v1391_v55, %v644_v61 }
 0x3e3   : > { %v720_v5 = vpop.xlane.xlu2 %719  ;;  %v649_v7 = vsel %vm648_vm9, %v1391_v55, %v645_v3 }
 0x3e4   : > { %v654_v8 = vsel %vm651_vm10, %v653_v4, %v649_v7  ;;  %1392 = vrcp.f32 %v720_v5  ;;  %vm729_vm12 = vweird.f32 %v720_v5  ;;  %v733_v25 = vand.u32 2147483647, %v720_v5 }
 0x3e5   : > { %v656_v11 = vmul.f32 %v1892_v16, %v654_v8  ;;  %v735_v16 = vand.u32 2147483648, %v720_v5 }
 0x3e6   : > { %v659_v9 = vpop.permute.xlu0 %658  ;;  %vm734_vm2 = vcmp.eq.f32.partialorder %v733_v25, 8.507059e+37 }
 0x3e7   : > { %671 = vmatpush.bf16.msra.mxu2 %v659_v9  ;;  %v657_v12 = vpack.c.bf16 %v656_v11, %v655_v10  ;;  %v736_v33 = vor.u32 1.1754944e-38, %v735_v16 }
 0x3ea   : > { %1222 = vmatmul.msk.bf16.vlgmr.msra.gmra.mxu2 %vm608_vm1, %v657_v12  ;;  %v1393_v17 = vpop.eup %1392 }
 0x3eb   : > { %v756_v15 = vpop.permute.xlu2 %755  ;;  %v725_v19 = vmul.f32 %v1393_v17, %v720_v5  ;;  %vm730_vm11 = vweird.f32 %v1393_v17 }
 0x3ec   : > { %768 = vmatpush.bf16.msrb.mxu2 %v756_v15  ;;  %vm731_vm13 = vmor %vm729_vm12, %vm730_vm11 }
 0x3ed   : > { %v726_v20 = vsub.f32 1.0, %v725_v19 }
 0x3ef   : > { %v727_v18 = vmul.f32 %v1393_v17, %v726_v20 }
 0x3f1   : > { %v728_v24 = vadd.f32 %v1393_v17, %v727_v18 }
 0x3f3   : > { %v1929_v13 = vpop.xlane.xlu1 %825  ;;  %v732_v28 = vsel %vm731_vm13, %v1393_v17, %v728_v24 }
 0x3f4   : > { %v737_v37 = vsel %vm734_vm2, %v736_v33, %v732_v28  ;;  %v841_v61 = vand.u32 2147483648, %v1929_v13  ;;  %vm835_vm10 = vweird.f32 %v1929_v13  ;;  %v839_v31 = vand.u32 2147483647, %v1929_v13 }
 0x3f5   : > { %v752_v41 = vmul.f32 %v1896_v22, %v737_v37 }
 0x3f6   : > { %v842_v5 = vor.u32 1.1754944e-38, %v841_v61  ;;  %vm840_vm13 = vcmp.eq.f32.partialorder %v839_v31, 8.507059e+37 }
 0x3fb   : > { %v723_v21 = vpop.xlane.xlu1 %722 }
 0x3fc   : > { %1394 = vrcp.f32 %v723_v21  ;;  %v749_v27 = vand.u32 2147483648, %v723_v21  ;;  %v747_v32 = vand.u32 2147483647, %v723_v21  ;;  %vm743_vm3 = vweird.f32 %v723_v21 }
 0x3fd   : > { %1396 = vrcp.f32 %v1929_v13 }
 0x3fe   : > { %v750_v36 = vor.u32 1.1754944e-38, %v749_v27  ;;  %vm748_vm5 = vcmp.eq.f32.partialorder %v747_v32, 8.507059e+37 }
 0x402   : > { %v1395_v23 = vpop.eup %1394 }
 0x403   : > { %v739_v14 = vmul.f32 %v1395_v23, %v723_v21  ;;  %vm744_vm15 = vweird.f32 %v1395_v23  ;;  %v1397_v46 = vpop.eup %1396  ;;  %v935_v48 = vpop.xlane.xlu1 %934 }
 0x404   : > { %vm745_vm4 = vmor %vm743_vm3, %vm744_vm15  ;;  %v831_v49 = vmul.f32 %v1397_v46, %v1929_v13  ;;  %vm836_vm7 = vweird.f32 %v1397_v46  ;;  %v961_v17 = vand.u32 2147483648, %v935_v48  ;;  %vm955_vm2 = vweird.f32 %v935_v48 }
 0x405   : > { %v740_v26 = vsub.f32 1.0, %v739_v14  ;;  %vm837_vm11 = vmor %vm835_vm10, %vm836_vm7  ;;  %v959_v19 = vand.u32 2147483647, %v935_v48 }
 0x406   : > { %v832_v52 = vsub.f32 1.0, %v831_v49 }
 0x407   : > { %v741_v29 = vmul.f32 %v1395_v23, %v740_v26 }
 0x408   : > { %v833_v56 = vmul.f32 %v1397_v46, %v832_v52 }
 0x409   : > { %v742_v34 = vadd.f32 %v1395_v23, %v741_v29 }
 0x40a   : > { %v834_v59 = vadd.f32 %v1397_v46, %v833_v56 }
 0x40b   : > { %v746_v39 = vsel %vm745_vm4, %v1395_v23, %v742_v34 }
 0x40c   : > { %v751_v40 = vsel %vm748_vm5, %v750_v36, %v746_v39  ;;  %v838_v4 = vsel %vm837_vm11, %v1397_v46, %v834_v59  ;;  %vm960_vm5 = vcmp.eq.f32.partialorder %v959_v19, 8.507059e+37 }
 0x40d   : > { %v753_v43 = vmul.f32 %v1905_v35, %v751_v40  ;;  %v843_v8 = vsel %vm840_vm13, %v842_v5, %v838_v4 }
 0x40e   : > { %v858_v13 = vmul.f32 %v1901_v30, %v843_v8 }
 0x40f   : > { %v754_v44 = vpack.c.bf16 %v753_v43, %v752_v41  ;;  %v1248_v43 = vld [vmem:[#allocation9 + $0x8] sm:$0xff] }
 0x410   : > { %1026 = vmatpush.bf16.msra.mxu0 %v1248_v43 }
 0x411   : > { %v829_v45 = vpop.xlane.xlu0 %828  ;;  %1224 = vmatmul.msk.bf16.vlgmr.msrb.gmra.mxu2 %vm608_vm1, %v754_v44 }
 0x412   : > { %1398 = vrcp.f32 %v829_v45  ;;  %v855_v58 = vand.u32 2147483648, %v829_v45  ;;  %vm849_vm8 = vweird.f32 %v829_v45  ;;  %v853_v60 = vand.u32 2147483647, %v829_v45 }
 0x413   : > { %1400 = vrcp.f32 %v935_v48 }
 0x414   : > { %v856_v3 = vor.u32 1.1754944e-38, %v855_v58  ;;  %vm854_vm12 = vcmp.eq.f32.partialorder %v853_v60, 8.507059e+37 }
 0x418   : > { %v1399_v50 = vpop.eup %1398 }
 0x419   : > { %v845_v51 = vmul.f32 %v1399_v50, %v829_v45  ;;  %v1401_v55 = vpop.eup %1400  ;;  %vm850_vm6 = vweird.f32 %v1399_v50 }
 0x41a   : > { %v951_v35 = vmul.f32 %v1401_v55, %v935_v48  ;;  %vm851_vm9 = vmor %vm849_vm8, %vm850_vm6  ;;  %vm956_vm15 = vweird.f32 %v1401_v55  ;;  %v1247_v48 = vld [vmem:[#allocation9] sm:$0xff] }
 0x41b   : > { %v846_v53 = vsub.f32 1.0, %v845_v51  ;;  %v968_v54 = vpop.permute.xlu1 %967  ;;  %vm957_vm3 = vmor %vm955_vm2, %vm956_vm15  ;;  %1027 = vmatpush.bf16.msra.mxu0 %v1247_v48 }
 0x41c   : > { %980 = vmatpush.bf16.msra.mxu2 %v968_v54  ;;  %v952_v62 = vsub.f32 1.0, %v951_v35  ;;  %v1361_v54 = vld [vmem:[%s2004_s7] ss:$0 sm:$0xff] }
 0x41d   : > { %v847_v22 = vmul.f32 %v1399_v50, %v846_v53 }
 0x41e   : > { %v953_v7 = vmul.f32 %v1401_v55, %v952_v62 }
 0x41f   : > { %v848_v57 = vadd.f32 %v1399_v50, %v847_v22 }
 0x420   : > { %v954_v11 = vadd.f32 %v1401_v55, %v953_v7 }
 0x421   : > { %v852_v63 = vsel %vm851_vm9, %v1399_v50, %v848_v57  ;;  %vm995_vm9 = vcmask 261312  }
 0x422   : > { %v857_v6 = vsel %vm854_vm12, %v856_v3, %v852_v63  ;;  %v958_v23 = vsel %vm957_vm3, %v1401_v55, %v954_v11 }
 0x423   : > { %v859_v9 = vmul.f32 %v1915_v42, %v857_v6  ;;  %v962_v42 = vor.u32 1.1754944e-38, %v961_v17 }
 0x424   : > { %v932_v1 = vpop.xlane.xlu2 %931 }
 0x425   : > { %1402 = vrcp.f32 %v932_v1  ;;  %v860_v21 = vpack.c.bf16 %v859_v9, %v858_v13  ;;  %v947_v18 = vand.u32 2147483648, %v932_v1  ;;  %v945_v14 = vand.u32 2147483647, %v932_v1 }
 0x426   : > { %vm941_vm6 = vweird.f32 %v932_v1  ;;  %v963_v25 = vsel %vm960_vm5, %v962_v42, %v958_v23 }
 0x427   : > { %v948_v30 = vor.u32 1.1754944e-38, %v947_v18  ;;  %vm946_vm8 = vcmp.eq.f32.partialorder %v945_v14, 8.507059e+37  ;;  %v965_v28 = vmul.f32 %v1910_v38, %v963_v25 }
 0x42b   : > { %v1403_v10 = vpop.eup %1402 }
 0x42c   : > { %v937_v12 = vmul.f32 %v1403_v10, %v932_v1  ;;  %v862_v15 = vpop.permute.xlu2 %861  ;;  %vm942_vm4 = vweird.f32 %v1403_v10 }
 0x42d   : > { %874 = vmatpush.bf16.msrb.mxu1 %v862_v15  ;;  %vm943_vm7 = vmor %vm941_vm6, %vm942_vm4 }
 0x42e   : > { %v938_v20 = vsub.f32 1.0, %v937_v12 }
 0x430   : > { %v939_v24 = vmul.f32 %v1403_v10, %v938_v20  ;;  %1226 = vmatmul.msk.bf16.vlgmr.msrb.gmra.mxu1 %vm608_vm1, %v860_v21 }
 0x432   : > { %v940_v16 = vadd.f32 %v1403_v10, %v939_v24 }
 0x434   : > { %v944_v26 = vsel %vm943_vm7, %v1403_v10, %v940_v16 }
 0x435   : > { %v949_v27 = vsel %vm946_vm8, %v948_v30, %v944_v26 }
 0x436   : > { %v964_v29 = vmul.f32 %v1921_v47, %v949_v27 }
 0x438   : > { %v966_v32 = vpack.c.bf16 %v965_v28, %v964_v29 }
 0x43a   : > { %1228 = vmatmul.msk.bf16.vlgmr.msra.gmra.mxu2 %vm608_vm1, %v966_v32  ;;  %vm889_vm1 = vcmask 195712  }
 0x46d   : > { %v673_v33 = vpop.f32.mrf.mxu2 }
 0x46e   : > { %678 = vst.msk [vmem:[#allocation2] sm:$0xff] %vm585_vm14, %v673_v33 }
 0x475   : > { %v675_v34 = vpop.f32.mrf.mxu2 }
 0x476   : > { %679 = vst.msk [vmem:[#allocation2 + $0x8] sm:$0xff] %vm585_vm14, %v675_v34  ;;  %vm783_vm14 = vcmask 130112  }
 0x494   : > { %v770_v36 = vpop.f32.mrf.mxu2 }
 0x49c   : > { %v772_v37 = vpop.f32.mrf.mxu2 }
 0x49d   : > { %779 = vrot.lane.b32.xlu1 %v772_v37, %s1638_s18 }
 0x4ad   : > { %v876_v39 = vpop.f32.mrf.mxu1 }
 0x4ae   : > { %883 = vrot.lane.b32.xlu2 %v876_v39, %s1639_s11 }
 0x4b5   : > { %v878_v38 = vpop.f32.mrf.mxu1 }
 0x4b6   : > { %777 = vrot.lane.b32.xlu2 %v770_v36, %s1638_s18  ;;  %885 = vrot.lane.b32.xlu1 %v878_v38, %s1639_s11 }
 0x4bd   : > { %v982_v47 = vpop.f32.mrf.mxu2 }
 0x4be   : > { %989 = vrot.lane.b32.xlu2 %v982_v47, %s1640_s13 }
 0x4c5   : > { %v984_v40 = vpop.f32.mrf.mxu2 }
 0x4c6   : > { %991 = vrot.lane.b32.xlu0 %v984_v40, %s1640_s13 }
 0x508   : > { %v884_v41 = vpop.permute.xlu2 %883 }
 0x50f   : > { %v780_v44 = vpop.permute.xlu1 %779 }
 0x510   : > { %785 = vst.msk [vmem:[#allocation2 + $0x8] sm:$0xff] %vm783_vm14, %v780_v44  ;;  %v778_v45 = vpop.permute.xlu2 %777 }
 0x511   : > { %784 = vst.msk [vmem:[#allocation2] sm:$0xff] %vm783_vm14, %v778_v45 }
 0x512   : > { %890 = vst.msk [vmem:[#allocation2] sm:$0xff] %vm889_vm1, %v884_v41 }
 0x518   : > { %v990_v46 = vpop.permute.xlu2 %989 }
 0x519   : > { %996 = vst.msk [vmem:[#allocation2] sm:$0xff] %vm995_vm9, %v990_v46 }
 0x520   : > { %v998_v51 = vld [vmem:[#allocation2] sm:$0xff] }
 0x528   : > { %v886_v49 = vpop.permute.xlu1 %885 }
 0x529   : > { %891 = vst.msk [vmem:[#allocation2 + $0x8] sm:$0xff] %vm889_vm1, %v886_v49 }
 0x538   : > { %v992_v50 = vpop.permute.xlu0 %991 }
 0x539   : > { %997 = vst.msk [vmem:[#allocation2 + $0x8] sm:$0xff] %vm995_vm9, %v992_v50 }
 0x540   : > { %v999_v52 = vld [vmem:[#allocation2 + $0x8] sm:$0xff] }
 0x541   : > { %v1000_v53 = vpack.c.bf16 %v999_v52, %v998_v51 }
 0x543   : > { %1237 = vmatmul.msk.bf16.vlgmr.msra.gmra.mxu0 %vm431_vm0, %v1000_v53 }
 0x5c0   : > { %v1029_v55 = vpop.f32.mrf.mxu0 }
 0x5c1   : > { %v1034_v22 = vadd.f32 %v1029_v55, %v1816_v0 }
 0x5c3   : > { %v1040_v56 = vadd.f32 %v1361_v54, %v1034_v22 }
 0x5c5   : > { %1042 = vst.msk [vmem:[%s422_s23] sm:$0xff] %vm431_vm0, %v1040_v56 }
 0x5c8   : > { %v1031_v35 = vpop.f32.mrf.mxu0 }
 0x5c9   : > { %v1035_v57 = vadd.f32 %v1031_v35, %v1820_v2 }
 0x5cb   : > { %v1041_v58 = vadd.f32 %v1361_v54, %v1035_v57 }
 0x5cd   : > { %1043 = vst.msk [vmem:[%s422_s23 + $0x8] sm:$0xff] %vm431_vm0, %v1041_v58 }
 0x5ce   : > { %1551 = shalt.err (!%p1548_p0)
}
 0x5cf   : > { %s1641_s19 = smov 128  }
 0x5d0   : > { %1262 = dma.vmem_to_hbm [thread:$0]  (%p1766_p7), %s1060_s25, 256, %s1062_s26, %s1045_s30, %s1641_s19, %s1641_s19, %s1638_s18  }
 0x5d1 PF: > { %s2026_s11 = sld [smem:[#allocation17_spill]]  ;;  %p1279_p3 = pnand %p1199_p11, %p1732_p6 }
 0x5d3   : > { %p1280_p5 = pneg %p1279_p3 }
 0x5d7   : > { %s1076_s15 = sand.u32 1, %s2026_s11  }
 0x5d8   : > { %s1077_s21 = scalar_lea.sflag [#allocation5], %s1076_s15 }
 0x5d9   : > { %1593 = dma.done.wait (%p1280_p5), %s1077_s21, 256  }
 0x5da   : > { %1595 = vsyncadd (%p1280_p5), %s1077_s21, 4294967040  ;;  %s28_s10 = sadd.s32 1, %s1618_s10   ;;  %s2028_s22 = sld [smem:[#allocation18_spill]] }
 0x5db   : > { %p25_p9 = scmp.ge.s32.totalorder %s28_s10, 4   ;;  %s2029_s29 = sld [smem:[#allocation22_spill]] }
 0x5dc   : > { %s2030_s30 = sld [smem:[#allocation19_spill]]  ;;  %s2032_s27 = smov %s1602_s28 }
 0x5dd   : > { %s2031_s9 = sld [smem:[#allocation21_spill]]  ;;  %27 = sbr.rel (!%p25_p9) target bundleno = 12 (0xc), region = 118 }
 0x5e0   : > { %s2033_s28 = smov %s2028_s22 }
 0x5e2   :  { %1083 = vsyncpa [#allocation4], 1 }
 0x5e3   :  { %1085 = vsyncpa [#allocation4 + $0x1], 1 }
 0x5e4   :  { %1086 = vsyncpa [#allocation7], 1 }
 0x5e5   :  { %1088 = vsyncpa [#allocation7 + $0x1], 1 }
 0x5e6   :  { %1089 = vsyncpa [#allocation10], 1 }
 0x5e7   :  { %1090 = vsyncpa [#allocation5], 1 }
 0x5e8   :  { %1092 = vsyncpa [#allocation5 + $0x1], 1 }

// kernel: tpu_custom_call.1
= control target key start
LH: loop header
LB: loop body
LE: loop exit
PB: predicated region body
PF: predicated region fallthrough
CT: control target
= control target key end

     0   :  { %s1997_s0 = inlined_call_operand.hbm [shape: f32[2,16,32], index: 0, kind: input, shape index: {}]   ;;  %s1998_s1 = inlined_call_operand.hbm [shape: f32[2,16,16], index: 1, kind: input, shape index: {}]   ;;  %s1999_s2 = inlined_call_operand.vmem [shape: f32[1,32], index: 2, kind: input, shape index: {}]   ;;  %s2000_s3 = inlined_call_operand.vmem [shape: f32[1,32], index: 3, kind: input, shape index: {}]   ;;  %s2001_s4 = inlined_call_operand.hbm [shape: bf16[32,96], index: 4, kind: input, shape index: {}]   ;;  %s2002_s5 = inlined_call_operand.vmem [shape: f32[1,96], index: 5, kind: input, shape index: {}]   ;;  %s2003_s6 = inlined_call_operand.hbm [shape: bf16[32,32], index: 6, kind: input, shape index: {}]   ;;  %s2004_s7 = inlined_call_operand.vmem [shape: f32[1,32], index: 7, kind: input, shape index: {}]   ;;  %s2005_s8 = inlined_call_operand.hbm [shape: f32[2,16,32], index: 8, kind: output, shape index: {}]  }
   0x1   :  { %2011 = sst [smem:[#allocation23_spill]] %s2001_s4 }
   0x2   :  { %2012 = sst [smem:[#allocation24_spill]] %s2003_s6 }
   0x3   :  { %13 = vsyncpa [#allocation4], 0 }
   0x4   :  { %15 = vsyncpa [#allocation4 + $0x1], 0 }
   0x5   :  { %16 = vsyncpa [#allocation7], 0 }
   0x6   :  { %18 = vsyncpa [#allocation7 + $0x1], 0 }
   0x7   :  { %19 = vsyncpa [#allocation10], 0 }
   0x8   :  { %20 = vsyncpa [#allocation5], 0 }
   0x9   :  { %22 = vsyncpa [#allocation5 + $0x1], 0  ;;  %s1687_s27 = smov 0   ;;  %s1689_s28 = smov 0  }
   0xa   :  { %s1691_s29 = smov 0   ;;  %s1693_s30 = smov 0  }
   0xb   :  { %s1695_s9 = smov 0   ;;  %s1697_s10 = smov 0  }
   0xc LB: > { %2013 = sst [smem:[#allocation17_spill]] %s1598_s27  ;;  %s1718_s11 = sadd.s32 4294967295, %s1618_s10   ;;  %s1618_s10 = sphi %s1697_s10, %s28_s10   ;;  %s1614_s9 = sphi %s1695_s9, %s2031_s9   ;;  %s1610_s30 = sphi %s1693_s30, %s2030_s30   ;;  %s1606_s29 = sphi %s1691_s29, %s2029_s29   ;;  %s1602_s28 = sphi %s1689_s28, %s2033_s28   ;;  %s1598_s27 = sphi %s1687_s27, %s2032_s27  }
   0xd   : > { %2014 = sst [smem:[#allocation18_spill]] %s1606_s29  ;;  %s1195_s12 = sadd.s32 4294967294, %s1618_s10  }
   0xe   : > { %2015 = sst [smem:[#allocation19_spill]] %s1614_s9  ;;  %p62_p0 = scmp.ne.s32.totalorder %s1602_s28, %s1598_s27 }
   0xf   : > { %p63_p1 = scmp.eq.s32.totalorder %s1718_s11, 0  ;;  %p242_p2 = scmp.eq.s32.totalorder %s1718_s11, 1 }
  0x10   : > { %p248_p3 = scmp.eq.s32.totalorder %s1195_s12, 1  ;;  %p1196_p5 = scmp.ge.s32.totalorder %s1618_s10, 1 }
  0x11   : > { %p1727_p4 = por %p63_p1, %p62_p0  ;;  %p255_p7 = scmp.lt.s32.totalorder %s1618_s10, 3 }
  0x12   : > { %p1732_p6 = por %p248_p3, %p62_p0  ;;  %s2019_s4 = sld [smem:[#allocation23_spill]] }
  0x13   : > { %p1740_p8 = pnand %p1196_p5, %p255_p7  ;;  %s1620_s19 = smov [#allocation8]  }
  0x14   : > { %s2017_s14 = scalar_select %p1732_p6, 1, 0 }
  0x15   : > { %p1264_p9 = pneg %p1740_p8  ;;  %s274_s20 = sshll.u32 %s1620_s19, 4  ;;  %s275_s20 = int_to_ptr.vmem [resolvable:$true] %s274_s20 }
  0x16   : > { %2018 = sst [smem:[#allocation20_spill]] %s2017_s14  ;;  %p1199_p11 = scmp.ge.s32.totalorder %s1618_s10, 2 }
  0x17   : > { %p1265_p10 = pnand %p1264_p9, %p63_p1  ;;  %s2021_s6 = sld [smem:[#allocation24_spill]] }
  0x18   : > { %s272_s17 = sshll.u32 %s2019_s4, 4  ;;  %s1621_s24 = smov 64   ;;  %s273_s17 = int_to_ptr.hbm [resolvable:$true] %s272_s17 }
  0x19   : > { %s1622_s25 = smov 4   ;;  %s1623_s26 = smov [#allocation9]  }
  0x1a   : > { %1267 = dma.hbm_to_vmem [thread:$0]  (!%p1265_p10), %s273_s17, 256, %s275_s20, [#allocation7], %s1621_s24, %s1621_s24, %s1622_s25  }
  0x1b   : > { %s291_s12 = sshll.u32 %s1623_s26, 4  ;;  %s40_s15 = sadd.s32 1, %s1614_s9  ;;  %s292_s12 = int_to_ptr.vmem [resolvable:$true] %s291_s12 }
  0x1c   : > { %s49_s16 = sadd.s32 1, %s1606_s29  ;;  %p42_p12 = scmp.ge.s32.totalorder %s40_s15, 2 }
  0x1d   : > { %s289_s23 = sshll.u32 %s2021_s6, 4  ;;  %p56_p13 = scmp.ne.s32.totalorder %s1606_s29, %s1602_s28  ;;  %s290_s23 = int_to_ptr.hbm [resolvable:$true] %s289_s23 }
  0x1e   : > { %1270 = dma.hbm_to_vmem [thread:$0]  (!%p1265_p10), %s290_s23, 256, %s292_s12, [#allocation10], %s1621_s24, %s1621_s24, %s1622_s25  }
  0x1f   : > { %p57_p0 = scmp.eq.s32.totalorder %s1618_s10, 0  ;;  %p1284_p3 = scmp.lt.s32.totalorder %s1618_s10, 2 }
  0x20   : > { %s2035_s15 = smov (%p42_p12, %s40_s15), 0  ;;  %p1766_p7 = por %p242_p2, %p56_p13 }
  0x21   : > { %2022 = sst [smem:[#allocation21_spill]] %s2035_s15  ;;  %p1760_p5 = por %p57_p0, %p56_p13 }
  0x22   : > { %s44_s20 = ssub.s32 %s1614_s9, %s2035_s15  ;;  %s308_s21 = sand.u32 1, %s1606_s29  }
  0x23   : > { %p47_p9 = scmp.eq.s32.totalorder %s44_s20, 0  ;;  %s1200_s22 = sshll.u32 %s308_s21, 4 }
  0x24   : > { %s1243_s23 = sshll.u32 %s1614_s9, 4  ;;  %s312_s6 = scalar_lea.vmem [#allocation3], %s1200_s22 }
  0x25   : > { %s1775_s24 = scalar_select %p47_p9, %s1606_s29, %s49_s16  }
  0x26   : > { %s319_s12 = scalar_lea.hbm %s1997_s0, %s1243_s23  ;;  %s322_s14 = sshll.u32 %s312_s6, 4  ;;  %s323_s14 = int_to_ptr.vmem [resolvable:$true] %s322_s14 }
  0x27   : > { %2025 = sst [smem:[#allocation22_spill]] %s1775_s24  ;;  %s320_s4 = sshll.u32 %s319_s12, 4  ;;  %s321_s4 = int_to_ptr.hbm [resolvable:$true] %s320_s4 }
  0x28   : > { %p1272_p2 = pnand %p1284_p3, %p1760_p5  ;;  %s343_s20 = scalar_lea.hbm %s1998_s1, %s1243_s23 }
  0x29   : > { %s309_s9 = scalar_lea.sflag [#allocation4], %s308_s21  ;;  %s1624_s16 = smov 128  }
  0x2a   : > { %s1625_s24 = smov 8   ;;  %s344_s29 = sshll.u32 %s343_s20, 4  ;;  %s345_s29 = int_to_ptr.hbm [resolvable:$true] %s344_s29 }
  0x2b   : > { %1274 = dma.hbm_to_vmem [thread:$0]  (!%p1272_p2), %s321_s4, 256, %s323_s14, %s309_s9, %s1624_s16, %s1624_s16, %s1625_s24  }
  0x2c   : > { %s336_s25 = scalar_lea.vmem [#allocation6], %s1200_s22  ;;  %s332_s12 = sand.u32 1, %s1618_s10  }
  0x2d   : > { %s346_s26 = sshll.u32 %s336_s25, 4  ;;  %s333_s6 = scalar_lea.sflag [#allocation7], %s332_s12  ;;  %s347_s26 = int_to_ptr.vmem [resolvable:$true] %s346_s26 }
  0x2e   : > { %1277 = dma.hbm_to_vmem [thread:$0]  (!%p1272_p2), %s345_s29, 256, %s347_s26, %s333_s6, %s1624_s16, %s1624_s16, %s1625_s24  }
  0x2f   : > { %358 = sbr.rel (%p1740_p8) target bundleno = 1489 (0x5d1), region = 52  ;;  %s1791_s19 = sand.u32 (!%p1740_p8), 1, %s1602_s28  }
  0x30   : > { %s1794_s27 = sshll.u32 (!%p1740_p8), %s1791_s19, 4  ;;  %s361_s4 = scalar_lea.sflag (!%p1740_p8), [#allocation4], %s1791_s19 }
  0x31   : > { %s364_s9 = scalar_lea.vmem (!%p1740_p8), [#allocation3], %s1794_s27 }
  0x34   : > { %1577 = dma.done.wait (%p1727_p4), %s361_s4, 256  }
  0x35   : > { %1579 = vsyncadd (%p1727_p4), %s361_s4, 4294967040  ;;  %s370_s29 = sand.u32 1, %s1718_s11   ;;  %s374_s18 = scalar_lea.vmem [#allocation6], %s1794_s27 }
  0x36   : > { %s371_s14 = scalar_lea.sflag [#allocation7], %s370_s29 }
  0x37   : > { %1581 = dma.done.wait (%p1727_p4), %s371_s14, 256  }
  0x38   : > { %1583 = vsyncadd (%p1727_p4), %s371_s14, 4294967040 }
  0x39   : > { %1585 = dma.done.wait (%p63_p1), [#allocation7], 256  }
  0x3a   : > { %1587 = vsyncadd (%p63_p1), [#allocation7], 4294967040 }
  0x3b   : > { %1589 = dma.done.wait (%p63_p1), [#allocation10], 256  }
  0x3c   : > { %1591 = vsyncadd (%p63_p1), [#allocation10], 4294967040  ;;  %vm431_vm0 = vcmask 261120   ;;  %v1816_v0 = vld [vmem:[%s364_s9] sm:$0xff]  ;;  %v1820_v2 = vld [vmem:[%s364_s9 + $0x8] sm:$0xff]  ;;  %v1626_v4 = vmov 32.0  }
  0x3d   : > { %v432_v1 = vsel %vm431_vm0, %v1816_v0, 0.0  ;;  %v435_v3 = vsel %vm431_vm0, %v1820_v2, 0.0  ;;  %1362 = vrcp.f32 %v1626_v4  ;;  %v1246_v21 = vld [vmem:[#allocation8 + $0x8] sm:$0xff]  ;;  %v1245_v23 = vld [vmem:[#allocation8] sm:$0xff]  ;;  %s1627_s24 = smov 72   ;;  %s1628_s20 = smov 96  }
  0x3e   : > { %433 = vadd.xlane.f32.xlu0 %v432_v1  ;;  %555 = vmatpush.bf16.msra.mxu0 %v1246_v21  ;;  %s1629_s16 = smov 120   ;;  %s1630_s25 = smov 88   ;;  %vm585_vm14 = vcmask 64512  }
  0x3f   : > { %s1631_s26 = smov 104   ;;  %s1632_s12 = smov 80  }
  0x40   : > { %s1633_s6 = smov 112   ;;  %s1634_s4 = smov 64  }
  0x41   : > { %s1635_s9 = smov 56   ;;  %s1636_s29 = smov 40  }
  0x42   : > { %556 = vmatpush.bf16.msra.mxu0 %v1245_v23  ;;  %s1637_s14 = smov 48   ;;  %s1639_s11 = smov 16  }
  0x43   : > { %v1363_v5 = vpop.eup %1362  ;;  %s1640_s13 = smov 24   ;;  %s1249_s22 = sshll.u32 %s1610_s30, 4 }
  0x44   : > { %v439_v6 = vmul.f32 32.0, %v1363_v5  ;;  %vm443_vm1 = vweird.f32 %v1363_v5  ;;  %s422_s23 = scalar_lea.vmem [#allocation11], %s1794_s27  ;;  %s1045_s30 = scalar_lea.sflag [#allocation5], %s1791_s19 }
  0x46   : > { %436 = vadd.xlane.f32.xlu0 %v435_v3  ;;  %v440_v7 = vsub.f32 1.0, %v439_v6 }
  0x48   : > { %v441_v8 = vmul.f32 %v1363_v5, %v440_v7 }
  0x4a   : > { %v442_v9 = vadd.f32 %v1363_v5, %v441_v8 }
  0x4c   : > { %v444_v10 = vsel %vm443_vm1, %v1363_v5, %v442_v9  ;;  %v1358_v5 = vld [vmem:[%s1999_s2] ss:$0 sm:$0xff]  ;;  %vm608_vm1 = vcmask 130048  }
  0xb1   : > { %v434_v11 = vpop.xlane.xlu0 %433 }
  0xb2   : > { %v445_v12 = vmul.f32 %v444_v10, %v434_v11  ;;  %v1359_v11 = vld [vmem:[%s2000_s3] ss:$0 sm:$0xff] }
  0xb4   : > { %v1825_v13 = vsub.f32 %v1816_v0, %v445_v12 }
  0xb6   : > { %v449_v14 = vmul.f32 %v1825_v13, %v1825_v13 }
  0xb8   : > { %v451_v15 = vsel %vm431_vm0, %v449_v14, 0.0 }
  0xb9   : > { %452 = vadd.xlane.f32.xlu1 %v451_v15  ;;  %v437_v16 = vpop.xlane.xlu0 %436 }
  0xba   : > { %v446_v17 = vmul.f32 %v444_v10, %v437_v16  ;;  %v1360_v16 = vld [vmem:[%s2002_s5] ss:$0 sm:$0xff] }
  0xbc   : > { %v1831_v18 = vsub.f32 %v1820_v2, %v446_v17 }
  0xbe   : > { %v450_v19 = vmul.f32 %v1831_v18, %v1831_v18 }
  0xc0   : > { %v454_v20 = vsel %vm431_vm0, %v450_v19, 0.0 }
  0xc1   : > { %455 = vadd.xlane.f32.xlu1 %v454_v20 }
 0x12c   : > { %v453_v22 = vpop.xlane.xlu1 %452 }
 0x12d   : > { %v457_v24 = vmul.f32 0.032258064, %v453_v22 }
 0x12f   : > { %1364 = vrsqrt.f32 %v457_v24  ;;  %vm466_vm2 = vcmp.eq.f32.partialorder %v457_v24, inf  ;;  %v469_v37 = vand.u32 2147483648, %v457_v24  ;;  %vm468_vm3 = vcmp.eq.f32.partialorder %v457_v24, 0.0 }
 0x134   : > { %v456_v25 = vpop.xlane.xlu1 %455 }
 0x135   : > { %v1365_v26 = vpop.eup %1364  ;;  %v458_v27 = vmul.f32 0.032258064, %v456_v25 }
 0x136   : > { %v460_v28 = vmul.f32 %v1365_v26, %v457_v24 }
 0x137   : > { %1366 = vrsqrt.f32 %v458_v27  ;;  %vm478_vm4 = vcmp.eq.f32.partialorder %v458_v27, inf  ;;  %v481_v45 = vand.u32 2147483648, %v458_v27  ;;  %vm480_vm5 = vcmp.eq.f32.partialorder %v458_v27, 0.0 }
 0x138   : > { %v461_v29 = vmul.f32 %v1365_v26, %v460_v28 }
 0x13a   : > { %v462_v30 = vmul.f32 0.5, %v461_v29 }
 0x13c   : > { %v463_v31 = vsub.f32 1.5, %v462_v30 }
 0x13d   : > { %v1367_v32 = vpop.eup %1366 }
 0x13e   : > { %v464_v33 = vmul.f32 %v1365_v26, %v463_v31  ;;  %v472_v34 = vmul.f32 %v1367_v32, %v458_v27 }
 0x140   : > { %v465_v35 = vmul.f32 %v464_v33, %v457_v24  ;;  %v473_v36 = vmul.f32 %v1367_v32, %v472_v34 }
 0x142   : > { %v467_v38 = vsel %vm466_vm2, %v457_v24, %v465_v35  ;;  %v474_v39 = vmul.f32 0.5, %v473_v36 }
 0x143   : > { %v470_v40 = vsel %vm468_vm3, %v469_v37, %v467_v38 }
 0x144   : > { %v475_v41 = vsub.f32 1.5, %v474_v39  ;;  %v483_v42 = vadd.f32 1e-06, %v470_v40 }
 0x146   : > { %v476_v43 = vmul.f32 %v1367_v32, %v475_v41  ;;  %1368 = vrcp.f32 %v483_v42  ;;  %v496_v53 = vand.u32 2147483648, %v483_v42  ;;  %vm490_vm7 = vweird.f32 %v483_v42 }
 0x147   : > { %v494_v55 = vand.u32 2147483647, %v483_v42 }
 0x148   : > { %v477_v44 = vmul.f32 %v476_v43, %v458_v27  ;;  %v497_v59 = vor.u32 1.1754944e-38, %v496_v53 }
 0x149   : > { %vm495_vm9 = vcmp.eq.f32.partialorder %v494_v55, 8.507059e+37 }
 0x14a   : > { %v479_v46 = vsel %vm478_vm4, %v458_v27, %v477_v44  ;;  %v569_v44 = vld [vmem:[%s374_s18] sm:$0xff] }
 0x14b   : > { %v482_v47 = vsel %vm480_vm5, %v481_v45, %v479_v46  ;;  %vm571_vm15 = vcmp.gt.f32.partialorder %v569_v44, 0.0 }
 0x14c   : > { %v1369_v48 = vpop.eup %1368  ;;  %v484_v49 = vadd.f32 1e-06, %v482_v47 }
 0x14d   : > { %v486_v50 = vmul.f32 %v1369_v48, %v483_v42  ;;  %vm491_vm6 = vweird.f32 %v1369_v48 }
 0x14e   : > { %1370 = vrcp.f32 %v484_v49  ;;  %vm492_vm8 = vmor %vm490_vm7, %vm491_vm6  ;;  %v510_v62 = vand.u32 2147483648, %v484_v49  ;;  %v508_v1 = vand.u32 2147483647, %v484_v49  ;;  %vm504_vm11 = vweird.f32 %v484_v49 }
 0x14f   : > { %v487_v51 = vsub.f32 1.0, %v486_v50 }
 0x150   : > { %v511_v6 = vor.u32 1.1754944e-38, %v510_v62  ;;  %vm509_vm13 = vcmp.eq.f32.partialorder %v508_v1, 8.507059e+37 }
 0x151   : > { %v488_v52 = vmul.f32 %v1369_v48, %v487_v51 }
 0x153   : > { %v489_v54 = vadd.f32 %v1369_v48, %v488_v52 }
 0x154   : > { %v1371_v56 = vpop.eup %1370 }
 0x155   : > { %v493_v57 = vsel %vm492_vm8, %v1369_v48, %v489_v54  ;;  %v500_v58 = vmul.f32 %v1371_v56, %v484_v49  ;;  %vm505_vm10 = vweird.f32 %v1371_v56  ;;  %v570_v48 = vld [vmem:[%s374_s18 + $0x8] sm:$0xff]  ;;  %s1638_s18 = smov 8  }
 0x156   : > { %v498_v61 = vsel %vm495_vm9, %v497_v59, %v493_v57  ;;  %vm506_vm12 = vmor %vm504_vm11, %vm505_vm10  ;;  %vm572_vm2 = vcmp.gt.f32.partialorder %v570_v48, 0.0 }
 0x157   : > { %v501_v60 = vsub.f32 1.0, %v500_v58  ;;  %v513_v4 = vmul.f32 %v498_v61, %v1825_v13 }
 0x159   : > { %v502_v63 = vmul.f32 %v1371_v56, %v501_v60  ;;  %v518_v10 = vmul.f32 %v1358_v5, %v513_v4 }
 0x15b   : > { %v503_v3 = vadd.f32 %v1371_v56, %v502_v63  ;;  %v523_v14 = vadd.f32 %v1359_v11, %v518_v10 }
 0x15d   : > { %v507_v7 = vsel %vm506_vm12, %v1371_v56, %v503_v3 }
 0x15e   : > { %v512_v8 = vsel %vm509_vm13, %v511_v6, %v507_v7 }
 0x15f   : > { %v514_v9 = vmul.f32 %v512_v8, %v1831_v18 }
 0x161   : > { %v519_v12 = vmul.f32 %v1358_v5, %v514_v9 }
 0x163   : > { %v524_v15 = vadd.f32 %v1359_v11, %v519_v12 }
 0x165   : > { %v525_v13 = vpack.c.bf16 %v524_v15, %v523_v14 }
 0x167   : > { %1220 = vmatmul.msk.bf16.vlgmr.msra.gmra.mxu0 %vm431_vm0, %v525_v13 }
 0x1e4   : > { %v558_v17 = vpop.f32.mrf.mxu0 }
 0x1e5   : > { %v559_v19 = vadd.f32 %v1360_v16, %v558_v17 }
 0x1e7   : > { %v563_v20 = vmul.f32 0.35355338, %v559_v19  ;;  %v567_v18 = vpack.c.bf16 %v559_v19, %v559_v19 }
 0x1e9   : > { %v565_v23 = vpack.c.bf16 %v563_v20, %v563_v20  ;;  %v580_v26 = vunpack.c.l.b16 %v567_v18 }
 0x1eb   : > { %v575_v29 = vunpack.c.l.b16 %v565_v23 }
 0x1ec   : > { %v560_v21 = vpop.f32.mrf.mxu0 }
 0x1ed   : > { %v561_v22 = vadd.f32 %v1360_v16, %v560_v21 }
 0x1ef   : > { %v564_v24 = vmul.f32 0.35355338, %v561_v22  ;;  %v568_v25 = vpack.c.bf16 %v561_v22, %v561_v22 }
 0x1f1   : > { %v566_v27 = vpack.c.bf16 %v564_v24, %v564_v24  ;;  %v581_v28 = vunpack.c.l.b16 %v568_v25 }
 0x1f3   : > { %v576_v30 = vunpack.c.l.b16 %v566_v27  ;;  %v1848_v31 = vpack.c.b16 %v581_v28, %v580_v26 }
 0x1f5   : > { %v577_v32 = vpack.c.b16 %v576_v30, %v575_v29  ;;  %894 = vrot.lane.b32.xlu1 %v1848_v31, %s1627_s24  ;;  %583 = vrot.lane.b32.xlu2 %v1848_v31, %s1628_s20 }
 0x1f7   : > { %680 = vrot.lane.b32.xlu0 %v577_v32, %s1629_s16  ;;  %s1058_s16 = scalar_lea.hbm %s2005_s8, %s1249_s22 }
 0x1fd   : > { %682 = vrot.lane.b32.xlu2 %v1848_v31, %s1630_s25  ;;  %s1059_s25 = sshll.u32 %s422_s23, 4  ;;  %s1060_s25 = int_to_ptr.vmem [resolvable:$true] %s1059_s25 }
 0x205   : > { %892 = vrot.lane.b32.xlu2 %v577_v32, %s1631_s26  ;;  %s1061_s26 = sshll.u32 %s1058_s16, 4  ;;  %s1062_s26 = int_to_ptr.hbm [resolvable:$true] %s1061_s26 }
 0x20d   : > { %788 = vrot.lane.b32.xlu2 %v1848_v31, %s1632_s12  ;;  %s1538_s12 = sshra.s32 %s1062_s26, 4  ;;  %s1539_s12 = int_to_ptr.hbm [resolvable:$true] %s1538_s12 }
 0x20e   : > { %s1540_s27 = scalar_lea.hbm %s1539_s12, 16  ;;  %p1545_p10 = scmp.lt.s32.totalorder %s1539_s12, %s2005_s8 }
 0x20f   : > { %p1541_p1 = scmp.ne.s32.totalorder %s1539_s12, %s1540_s27 }
 0x211   : > { %p1542_p4 = pnand %p1541_p1, %p1766_p7 }
 0x213   : > { %p1543_p8 = pneg %p1542_p4 }
 0x215   : > { %786 = vrot.lane.b32.xlu2 %v577_v32, %s1633_s6 }
 0x24f   : > { %v584_v33 = vpop.permute.xlu2 %583 }
 0x250   : > { %v590_v34 = vsel %vm585_vm14, %v584_v33, 0 }
 0x251   : > { %599 = vmatpush.bf16.xpose.msra.mxu1 %v590_v34 }
 0x257   : > { %v683_v35 = vpop.permute.xlu2 %682 }
 0x258   : > { %1221 = vmatmul.msk.bf16.vlgmr.msra.gmra.mxu1 %vm585_vm14, %v577_v32  ;;  %v688_v36 = vsel %vm585_vm14, %v683_v35, 0 }
 0x259   : > { %697 = vmatpush.bf16.xpose.msra.mxu3 %v688_v36 }
 0x25f   : > { %v893_v37 = vpop.permute.xlu2 %892 }
 0x267   : > { %v895_v38 = vpop.permute.xlu1 %894  ;;  %v789_v39 = vpop.permute.xlu2 %788 }
 0x268   : > { %v794_v40 = vsel %vm585_vm14, %v789_v39, 0  ;;  %v900_v41 = vsel %vm585_vm14, %v895_v38, 0 }
 0x269   : > { %803 = vmatpush.bf16.xpose.msrb.mxu0 %v794_v40  ;;  %909 = vmatpush.bf16.xpose.msrb.mxu3 %v900_v41  ;;  %v681_v42 = vpop.permute.xlu0 %680 }
 0x26a   : > { %1223 = vmatmul.msk.bf16.vlgmr.msra.gmra.mxu3 %vm585_vm14, %v681_v42 }
 0x26f   : > { %v787_v43 = vpop.permute.xlu2 %786 }
 0x270   : > { %1225 = vmatmul.msk.bf16.vlgmr.msrb.gmra.mxu0 %vm585_vm14, %v787_v43 }
 0x27a   : > { %1227 = vmatmul.msk.bf16.vlgmr.msrb.gmra.mxu3 %vm585_vm14, %v893_v37 }
 0x2d5   : > { %v601_v45 = vpop.f32.mrf.mxu1 }
 0x2d6   : > { %v606_v46 = vsel %vm571_vm15, %v601_v45, -1e+09 }
 0x2d7   : > { %v609_v47 = vsel %vm608_vm1, %v606_v46, -inf }
 0x2d8   : > { %610 = vmax.xlane.f32.xlu0 %v609_v47 }
 0x2dd   : > { %v603_v49 = vpop.f32.mrf.mxu1 }
 0x2de   : > { %v607_v50 = vsel %vm572_vm2, %v603_v49, -1e+09 }
 0x2df   : > { %v612_v51 = vsel %vm608_vm1, %v607_v50, -inf }
 0x2e0   : > { %613 = vmax.xlane.f32.xlu2 %v612_v51 }
 0x2ed   : > { %v699_v52 = vpop.f32.mrf.mxu3  ;;  %v805_v53 = vpop.f32.mrf.mxu0 }
 0x2ee   : > { %v704_v54 = vsel %vm571_vm15, %v699_v52, -1e+09  ;;  %v810_v62 = vsel %vm571_vm15, %v805_v53, -1e+09 }
 0x2ef   : > { %v706_v55 = vsel %vm608_vm1, %v704_v54, -inf  ;;  %v812_v3 = vsel %vm608_vm1, %v810_v62, -inf }
 0x2f0   : > { %707 = vmax.xlane.f32.xlu1 %v706_v55 }
 0x2f5   : > { %v701_v56 = vpop.f32.mrf.mxu3  ;;  %v807_v57 = vpop.f32.mrf.mxu0 }
 0x2f6   : > { %v705_v58 = vsel %vm572_vm2, %v701_v56, -1e+09  ;;  %v1874_v59 = vsel %vm572_vm2, %v807_v57, -1e+09 }
 0x2f7   : > { %v709_v60 = vsel %vm608_vm1, %v705_v58, -inf  ;;  %v815_v61 = vsel %vm608_vm1, %v1874_v59, -inf }
 0x2f8   : > { %710 = vmax.xlane.f32.xlu0 %v709_v60  ;;  %816 = vmax.xlane.f32.xlu2 %v815_v61 }
 0x2fd   : > { %v911_v63 = vpop.f32.mrf.mxu3 }
 0x2fe   : > { %v1881_v1 = vsel %vm571_vm15, %v911_v63, -1e+09 }
 0x2ff   : > { %v918_v4 = vsel %vm608_vm1, %v1881_v1, -inf }
 0x300   : > { %813 = vmax.xlane.f32.xlu0 %v812_v3  ;;  %919 = vmax.xlane.f32.xlu2 %v918_v4 }
 0x305   : > { %v913_v5 = vpop.f32.mrf.mxu3 }
 0x306   : > { %v917_v6 = vsel %vm572_vm2, %v913_v5, -1e+09 }
 0x307   : > { %v921_v7 = vsel %vm608_vm1, %v917_v6, -inf }
 0x308   : > { %922 = vmax.xlane.f32.xlu1 %v921_v7 }
 0x34b   : > { %v611_v8 = vpop.xlane.xlu0 %610 }
 0x34c   : > { %v615_v9 = vsub.f32 %v606_v46, %v611_v8 }
 0x34e   : > { %v617_v10 = vmul.f32 1.442695, %v615_v9 }
 0x350   : > { %1372 = vpow2.f32 %v617_v10 }
 0x353   : > { %v614_v11 = vpop.xlane.xlu2 %613 }
 0x354   : > { %v616_v12 = vsub.f32 %v607_v50, %v614_v11 }
 0x356   : > { %v1888_v14 = vpop.eup %1372  ;;  %v619_v15 = vmul.f32 1.442695, %v616_v12 }
 0x357   : > { %v621_v13 = vsel %vm608_vm1, %v1888_v14, 0.0 }
 0x358   : > { %1374 = vpow2.f32 %v619_v15  ;;  %622 = vadd.xlane.f32.xlu1 %v621_v13 }
 0x35e   : > { %v1892_v16 = vpop.eup %1374 }
 0x35f   : > { %v624_v17 = vsel %vm608_vm1, %v1892_v16, 0.0 }
 0x360   : > { %625 = vadd.xlane.f32.xlu0 %v624_v17 }
 0x363   : > { %v708_v19 = vpop.xlane.xlu1 %707 }
 0x364   : > { %v712_v20 = vsub.f32 %v704_v54, %v708_v19 }
 0x366   : > { %v714_v21 = vmul.f32 1.442695, %v712_v20 }
 0x368   : > { %1376 = vpow2.f32 %v714_v21 }
 0x36b   : > { %v711_v18 = vpop.xlane.xlu0 %710  ;;  %v817_v37 = vpop.xlane.xlu2 %816 }
 0x36c   : > { %v713_v26 = vsub.f32 %v705_v58, %v711_v18  ;;  %v819_v39 = vsub.f32 %v1874_v59, %v817_v37 }
 0x36e   : > { %v1896_v22 = vpop.eup %1376  ;;  %v716_v28 = vmul.f32 1.442695, %v713_v26  ;;  %v822_v41 = vmul.f32 1.442695, %v819_v39 }
 0x36f   : > { %v718_v23 = vsel %vm608_vm1, %v1896_v22, 0.0 }
 0x370   : > { %719 = vadd.xlane.f32.xlu2 %v718_v23 }
 0x373   : > { %v814_v24 = vpop.xlane.xlu0 %813  ;;  %v920_v43 = vpop.xlane.xlu2 %919 }
 0x374   : > { %v818_v25 = vsub.f32 %v810_v62, %v814_v24  ;;  %658 = vrot.lane.b32.xlu0 %v1848_v31, %s1634_s4  ;;  %v924_v45 = vsub.f32 %v1881_v1, %v920_v43 }
 0x376   : > { %v820_v27 = vmul.f32 1.442695, %v818_v25  ;;  %v926_v46 = vmul.f32 1.442695, %v924_v45 }
 0x378   : > { %1378 = vpow2.f32 %v820_v27 }
 0x379   : > { %1380 = vpow2.f32 %v716_v28 }
 0x37b   : > { %v923_v29 = vpop.xlane.xlu1 %922 }
 0x37c   : > { %v925_v32 = vsub.f32 %v917_v6, %v923_v29 }
 0x37e   : > { %v1901_v30 = vpop.eup %1378  ;;  %v928_v34 = vmul.f32 1.442695, %v925_v32 }
 0x37f   : > { %v824_v33 = vsel %vm608_vm1, %v1901_v30, 0.0  ;;  %v1905_v35 = vpop.eup %1380 }
 0x380   : > { %825 = vadd.xlane.f32.xlu1 %v824_v33  ;;  %1382 = vpow2.f32 %v928_v34  ;;  %v721_v36 = vsel %vm608_vm1, %v1905_v35, 0.0 }
 0x381   : > { %1384 = vpow2.f32 %v822_v41 }
 0x382   : > { %1386 = vpow2.f32 %v926_v46 }
 0x386   : > { %v1910_v38 = vpop.eup %1382 }
 0x387   : > { %v933_v40 = vsel %vm608_vm1, %v1910_v38, 0.0  ;;  %v1915_v42 = vpop.eup %1384 }
 0x388   : > { %722 = vadd.xlane.f32.xlu1 %v721_v36  ;;  %755 = vrot.lane.b32.xlu2 %v1848_v31, %s1635_s9  ;;  %v827_v44 = vsel %vm608_vm1, %v1915_v42, 0.0  ;;  %v1921_v47 = vpop.eup %1386  ;;  %s1544_s9 = scalar_lea.hbm %s2005_s8, 32 }
 0x389   : > { %v930_v48 = vsel %vm608_vm1, %v1921_v47, 0.0  ;;  %p1546_p12 = scmp.lt.s32.totalorder %s1544_s9, %s1540_s27 }
 0x38b   : > { %p1547_p13 = por %p1546_p12, %p1545_p10 }
 0x38d   : > { %p1548_p0 = pnand %p1547_p13, %p1543_p8 }
 0x390   : > { %934 = vadd.xlane.f32.xlu1 %v933_v40 }
 0x39e   : > { %828 = vadd.xlane.f32.xlu0 %v827_v44 }
 0x3a9   : > { %967 = vrot.lane.b32.xlu1 %v1848_v31, %s1636_s29 }
 0x3b1   : > { %931 = vadd.xlane.f32.xlu2 %v930_v48 }
 0x3c9   : > { %861 = vrot.lane.b32.xlu2 %v1848_v31, %s1637_s14 }
 0x3cb   : > { %v623_v49 = vpop.xlane.xlu1 %622 }
 0x3cc   : > { %1388 = vrcp.f32 %v623_v49  ;;  %v638_v58 = vand.u32 2147483648, %v623_v49  ;;  %vm632_vm4 = vweird.f32 %v623_v49  ;;  %v636_v60 = vand.u32 2147483647, %v623_v49 }
 0x3ce   : > { %v639_v1 = vor.u32 1.1754944e-38, %v638_v58  ;;  %vm637_vm8 = vcmp.eq.f32.partialorder %v636_v60, 8.507059e+37 }
 0x3d2   : > { %v1389_v50 = vpop.eup %1388 }
 0x3d3   : > { %v628_v51 = vmul.f32 %v1389_v50, %v623_v49  ;;  %v626_v52 = vpop.xlane.xlu0 %625  ;;  %vm633_vm3 = vweird.f32 %v1389_v50 }
 0x3d4   : > { %1390 = vrcp.f32 %v626_v52  ;;  %vm634_vm5 = vmor %vm632_vm4, %vm633_vm3  ;;  %v652_v31 = vand.u32 2147483648, %v626_v52  ;;  %v650_v62 = vand.u32 2147483647, %v626_v52  ;;  %vm646_vm7 = vweird.f32 %v626_v52 }
 0x3d5   : > { %v629_v53 = vsub.f32 1.0, %v628_v51 }
 0x3d6   : > { %v653_v4 = vor.u32 1.1754944e-38, %v652_v31  ;;  %vm651_vm10 = vcmp.eq.f32.partialorder %v650_v62, 8.507059e+37 }
 0x3d7   : > { %v630_v54 = vmul.f32 %v1389_v50, %v629_v53 }
 0x3d9   : > { %v631_v57 = vadd.f32 %v1389_v50, %v630_v54 }
 0x3da   : > { %v1391_v55 = vpop.eup %1390 }
 0x3db   : > { %v642_v56 = vmul.f32 %v1391_v55, %v626_v52  ;;  %vm647_vm6 = vweird.f32 %v1391_v55  ;;  %v635_v63 = vsel %vm634_vm5, %v1389_v50, %v631_v57 }
 0x3dc   : > { %vm648_vm9 = vmor %vm646_vm7, %vm647_vm6  ;;  %v640_v6 = vsel %vm637_vm8, %v639_v1, %v635_v63 }
 0x3dd   : > { %v643_v59 = vsub.f32 1.0, %v642_v56  ;;  %v655_v10 = vmul.f32 %v1888_v14, %v640_v6 }
 0x3df   : > { %v644_v61 = vmul.f32 %v1391_v55, %v643_v59 }
 0x3e1   : > { %v645_v3 = vadd.f32 %v1391_v55, %v644_v61 }
 0x3e3   : > { %v720_v5 = vpop.xlane.xlu2 %719  ;;  %v649_v7 = vsel %vm648_vm9, %v1391_v55, %v645_v3 }
 0x3e4   : > { %v654_v8 = vsel %vm651_vm10, %v653_v4, %v649_v7  ;;  %1392 = vrcp.f32 %v720_v5  ;;  %vm729_vm12 = vweird.f32 %v720_v5  ;;  %v733_v25 = vand.u32 2147483647, %v720_v5 }
 0x3e5   : > { %v656_v11 = vmul.f32 %v1892_v16, %v654_v8  ;;  %v735_v16 = vand.u32 2147483648, %v720_v5 }
 0x3e6   : > { %v659_v9 = vpop.permute.xlu0 %658  ;;  %vm734_vm2 = vcmp.eq.f32.partialorder %v733_v25, 8.507059e+37 }
 0x3e7   : > { %671 = vmatpush.bf16.msra.mxu2 %v659_v9  ;;  %v657_v12 = vpack.c.bf16 %v656_v11, %v655_v10  ;;  %v736_v33 = vor.u32 1.1754944e-38, %v735_v16 }
 0x3ea   : > { %1222 = vmatmul.msk.bf16.vlgmr.msra.gmra.mxu2 %vm608_vm1, %v657_v12  ;;  %v1393_v17 = vpop.eup %1392 }
 0x3eb   : > { %v756_v15 = vpop.permute.xlu2 %755  ;;  %v725_v19 = vmul.f32 %v1393_v17, %v720_v5  ;;  %vm730_vm11 = vweird.f32 %v1393_v17 }
 0x3ec   : > { %768 = vmatpush.bf16.msrb.mxu2 %v756_v15  ;;  %vm731_vm13 = vmor %vm729_vm12, %vm730_vm11 }
 0x3ed   : > { %v726_v20 = vsub.f32 1.0, %v725_v19 }
 0x3ef   : > { %v727_v18 = vmul.f32 %v1393_v17, %v726_v20 }
 0x3f1   : > { %v728_v24 = vadd.f32 %v1393_v17, %v727_v18 }
 0x3f3   : > { %v1929_v13 = vpop.xlane.xlu1 %825  ;;  %v732_v28 = vsel %vm731_vm13, %v1393_v17, %v728_v24 }
 0x3f4   : > { %v737_v37 = vsel %vm734_vm2, %v736_v33, %v732_v28  ;;  %v841_v61 = vand.u32 2147483648, %v1929_v13  ;;  %vm835_vm10 = vweird.f32 %v1929_v13  ;;  %v839_v31 = vand.u32 2147483647, %v1929_v13 }
 0x3f5   : > { %v752_v41 = vmul.f32 %v1896_v22, %v737_v37 }
 0x3f6   : > { %v842_v5 = vor.u32 1.1754944e-38, %v841_v61  ;;  %vm840_vm13 = vcmp.eq.f32.partialorder %v839_v31, 8.507059e+37 }
 0x3fb   : > { %v723_v21 = vpop.xlane.xlu1 %722 }
 0x3fc   : > { %1394 = vrcp.f32 %v723_v21  ;;  %v749_v27 = vand.u32 2147483648, %v723_v21  ;;  %v747_v32 = vand.u32 2147483647, %v723_v21  ;;  %vm743_vm3 = vweird.f32 %v723_v21 }
 0x3fd   : > { %1396 = vrcp.f32 %v1929_v13 }
 0x3fe   : > { %v750_v36 = vor.u32 1.1754944e-38, %v749_v27  ;;  %vm748_vm5 = vcmp.eq.f32.partialorder %v747_v32, 8.507059e+37 }
 0x402   : > { %v1395_v23 = vpop.eup %1394 }
 0x403   : > { %v739_v14 = vmul.f32 %v1395_v23, %v723_v21  ;;  %vm744_vm15 = vweird.f32 %v1395_v23  ;;  %v1397_v46 = vpop.eup %1396  ;;  %v935_v48 = vpop.xlane.xlu1 %934 }
 0x404   : > { %vm745_vm4 = vmor %vm743_vm3, %vm744_vm15  ;;  %v831_v49 = vmul.f32 %v1397_v46, %v1929_v13  ;;  %vm836_vm7 = vweird.f32 %v1397_v46  ;;  %v961_v17 = vand.u32 2147483648, %v935_v48  ;;  %vm955_vm2 = vweird.f32 %v935_v48 }
 0x405   : > { %v740_v26 = vsub.f32 1.0, %v739_v14  ;;  %vm837_vm11 = vmor %vm835_vm10, %vm836_vm7  ;;  %v959_v19 = vand.u32 2147483647, %v935_v48 }
 0x406   : > { %v832_v52 = vsub.f32 1.0, %v831_v49 }
 0x407   : > { %v741_v29 = vmul.f32 %v1395_v23, %v740_v26 }
 0x408   : > { %v833_v56 = vmul.f32 %v1397_v46, %v832_v52 }
 0x409   : > { %v742_v34 = vadd.f32 %v1395_v23, %v741_v29 }
 0x40a   : > { %v834_v59 = vadd.f32 %v1397_v46, %v833_v56 }
 0x40b   : > { %v746_v39 = vsel %vm745_vm4, %v1395_v23, %v742_v34 }
 0x40c   : > { %v751_v40 = vsel %vm748_vm5, %v750_v36, %v746_v39  ;;  %v838_v4 = vsel %vm837_vm11, %v1397_v46, %v834_v59  ;;  %vm960_vm5 = vcmp.eq.f32.partialorder %v959_v19, 8.507059e+37 }
 0x40d   : > { %v753_v43 = vmul.f32 %v1905_v35, %v751_v40  ;;  %v843_v8 = vsel %vm840_vm13, %v842_v5, %v838_v4 }
 0x40e   : > { %v858_v13 = vmul.f32 %v1901_v30, %v843_v8 }
 0x40f   : > { %v754_v44 = vpack.c.bf16 %v753_v43, %v752_v41  ;;  %v1248_v43 = vld [vmem:[#allocation9 + $0x8] sm:$0xff] }
 0x410   : > { %1026 = vmatpush.bf16.msra.mxu0 %v1248_v43 }
 0x411   : > { %v829_v45 = vpop.xlane.xlu0 %828  ;;  %1224 = vmatmul.msk.bf16.vlgmr.msrb.gmra.mxu2 %vm608_vm1, %v754_v44 }
 0x412   : > { %1398 = vrcp.f32 %v829_v45  ;;  %v855_v58 = vand.u32 2147483648, %v829_v45  ;;  %vm849_vm8 = vweird.f32 %v829_v45  ;;  %v853_v60 = vand.u32 2147483647, %v829_v45 }
 0x413   : > { %1400 = vrcp.f32 %v935_v48 }
 0x414   : > { %v856_v3 = vor.u32 1.1754944e-38, %v855_v58  ;;  %vm854_vm12 = vcmp.eq.f32.partialorder %v853_v60, 8.507059e+37 }
 0x418   : > { %v1399_v50 = vpop.eup %1398 }
 0x419   : > { %v845_v51 = vmul.f32 %v1399_v50, %v829_v45  ;;  %v1401_v55 = vpop.eup %1400  ;;  %vm850_vm6 = vweird.f32 %v1399_v50 }
 0x41a   : > { %v951_v35 = vmul.f32 %v1401_v55, %v935_v48  ;;  %vm851_vm9 = vmor %vm849_vm8, %vm850_vm6  ;;  %vm956_vm15 = vweird.f32 %v1401_v55  ;;  %v1247_v48 = vld [vmem:[#allocation9] sm:$0xff] }
 0x41b   : > { %v846_v53 = vsub.f32 1.0, %v845_v51  ;;  %v968_v54 = vpop.permute.xlu1 %967  ;;  %vm957_vm3 = vmor %vm955_vm2, %vm956_vm15  ;;  %1027 = vmatpush.bf16.msra.mxu0 %v1247_v48 }
 0x41c   : > { %980 = vmatpush.bf16.msra.mxu2 %v968_v54  ;;  %v952_v62 = vsub.f32 1.0, %v951_v35  ;;  %v1361_v54 = vld [vmem:[%s2004_s7] ss:$0 sm:$0xff] }
 0x41d   : > { %v847_v22 = vmul.f32 %v1399_v50, %v846_v53 }
 0x41e   : > { %v953_v7 = vmul.f32 %v1401_v55, %v952_v62 }
 0x41f   : > { %v848_v57 = vadd.f32 %v1399_v50, %v847_v22 }
 0x420   : > { %v954_v11 = vadd.f32 %v1401_v55, %v953_v7 }
 0x421   : > { %v852_v63 = vsel %vm851_vm9, %v1399_v50, %v848_v57  ;;  %vm995_vm9 = vcmask 261312  }
 0x422   : > { %v857_v6 = vsel %vm854_vm12, %v856_v3, %v852_v63  ;;  %v958_v23 = vsel %vm957_vm3, %v1401_v55, %v954_v11 }
 0x423   : > { %v859_v9 = vmul.f32 %v1915_v42, %v857_v6  ;;  %v962_v42 = vor.u32 1.1754944e-38, %v961_v17 }
 0x424   : > { %v932_v1 = vpop.xlane.xlu2 %931 }
 0x425   : > { %1402 = vrcp.f32 %v932_v1  ;;  %v860_v21 = vpack.c.bf16 %v859_v9, %v858_v13  ;;  %v947_v18 = vand.u32 2147483648, %v932_v1  ;;  %v945_v14 = vand.u32 2147483647, %v932_v1 }
 0x426   : > { %vm941_vm6 = vweird.f32 %v932_v1  ;;  %v963_v25 = vsel %vm960_vm5, %v962_v42, %v958_v23 }
 0x427   : > { %v948_v30 = vor.u32 1.1754944e-38, %v947_v18  ;;  %vm946_vm8 = vcmp.eq.f32.partialorder %v945_v14, 8.507059e+37  ;;  %v965_v28 = vmul.f32 %v1910_v38, %v963_v25 }
 0x42b   : > { %v1403_v10 = vpop.eup %1402 }
 0x42c   : > { %v937_v12 = vmul.f32 %v1403_v10, %v932_v1  ;;  %v862_v15 = vpop.permute.xlu2 %861  ;;  %vm942_vm4 = vweird.f32 %v1403_v10 }
 0x42d   : > { %874 = vmatpush.bf16.msrb.mxu1 %v862_v15  ;;  %vm943_vm7 = vmor %vm941_vm6, %vm942_vm4 }
 0x42e   : > { %v938_v20 = vsub.f32 1.0, %v937_v12 }
 0x430   : > { %v939_v24 = vmul.f32 %v1403_v10, %v938_v20  ;;  %1226 = vmatmul.msk.bf16.vlgmr.msrb.gmra.mxu1 %vm608_vm1, %v860_v21 }
 0x432   : > { %v940_v16 = vadd.f32 %v1403_v10, %v939_v24 }
 0x434   : > { %v944_v26 = vsel %vm943_vm7, %v1403_v10, %v940_v16 }
 0x435   : > { %v949_v27 = vsel %vm946_vm8, %v948_v30, %v944_v26 }
 0x436   : > { %v964_v29 = vmul.f32 %v1921_v47, %v949_v27 }
 0x438   : > { %v966_v32 = vpack.c.bf16 %v965_v28, %v964_v29 }
 0x43a   : > { %1228 = vmatmul.msk.bf16.vlgmr.msra.gmra.mxu2 %vm608_vm1, %v966_v32  ;;  %vm889_vm1 = vcmask 195712  }
 0x46d   : > { %v673_v33 = vpop.f32.mrf.mxu2 }
 0x46e   : > { %678 = vst.msk [vmem:[#allocation2] sm:$0xff] %vm585_vm14, %v673_v33 }
 0x475   : > { %v675_v34 = vpop.f32.mrf.mxu2 }
 0x476   : > { %679 = vst.msk [vmem:[#allocation2 + $0x8] sm:$0xff] %vm585_vm14, %v675_v34  ;;  %vm783_vm14 = vcmask 130112  }
 0x494   : > { %v770_v36 = vpop.f32.mrf.mxu2 }
 0x49c   : > { %v772_v37 = vpop.f32.mrf.mxu2 }
 0x49d   : > { %779 = vrot.lane.b32.xlu1 %v772_v37, %s1638_s18 }
 0x4ad   : > { %v876_v39 = vpop.f32.mrf.mxu1 }
 0x4ae   : > { %883 = vrot.lane.b32.xlu2 %v876_v39, %s1639_s11 }
 0x4b5   : > { %v878_v38 = vpop.f32.mrf.mxu1 }
 0x4b6   : > { %777 = vrot.lane.b32.xlu2 %v770_v36, %s1638_s18  ;;  %885 = vrot.lane.b32.xlu1 %v878_v38, %s1639_s11 }
 0x4bd   : > { %v982_v47 = vpop.f32.mrf.mxu2 }
 0x4be   : > { %989 = vrot.lane.b32.xlu2 %v982_v47, %s1640_s13 }
 0x4c5   : > { %v984_v40 = vpop.f32.mrf.mxu2 }
 0x4c6   : > { %991 = vrot.lane.b32.xlu0 %v984_v40, %s1640_s13 }
 0x508   : > { %v884_v41 = vpop.permute.xlu2 %883 }
 0x50f   : > { %v780_v44 = vpop.permute.xlu1 %779 }
 0x510   : > { %785 = vst.msk [vmem:[#allocation2 + $0x8] sm:$0xff] %vm783_vm14, %v780_v44  ;;  %v778_v45 = vpop.permute.xlu2 %777 }
 0x511   : > { %784 = vst.msk [vmem:[#allocation2] sm:$0xff] %vm783_vm14, %v778_v45 }
 0x512   : > { %890 = vst.msk [vmem:[#allocation2] sm:$0xff] %vm889_vm1, %v884_v41 }
 0x518   : > { %v990_v46 = vpop.permute.xlu2 %989 }
 0x519   : > { %996 = vst.msk [vmem:[#allocation2] sm:$0xff] %vm995_vm9, %v990_v46 }
 0x520   : > { %v998_v51 = vld [vmem:[#allocation2] sm:$0xff] }
 0x528   : > { %v886_v49 = vpop.permute.xlu1 %885 }
 0x529   : > { %891 = vst.msk [vmem:[#allocation2 + $0x8] sm:$0xff] %vm889_vm1, %v886_v49 }
 0x538   : > { %v992_v50 = vpop.permute.xlu0 %991 }
 0x539   : > { %997 = vst.msk [vmem:[#allocation2 + $0x8] sm:$0xff] %vm995_vm9, %v992_v50 }
 0x540   : > { %v999_v52 = vld [vmem:[#allocation2 + $0x8] sm:$0xff] }
 0x541   : > { %v1000_v53 = vpack.c.bf16 %v999_v52, %v998_v51 }
 0x543   : > { %1237 = vmatmul.msk.bf16.vlgmr.msra.gmra.mxu0 %vm431_vm0, %v1000_v53 }
 0x5c0   : > { %v1029_v55 = vpop.f32.mrf.mxu0 }
 0x5c1   : > { %v1034_v22 = vadd.f32 %v1029_v55, %v1816_v0 }
 0x5c3   : > { %v1040_v56 = vadd.f32 %v1361_v54, %v1034_v22 }
 0x5c5   : > { %1042 = vst.msk [vmem:[%s422_s23] sm:$0xff] %vm431_vm0, %v1040_v56 }
 0x5c8   : > { %v1031_v35 = vpop.f32.mrf.mxu0 }
 0x5c9   : > { %v1035_v57 = vadd.f32 %v1031_v35, %v1820_v2 }
 0x5cb   : > { %v1041_v58 = vadd.f32 %v1361_v54, %v1035_v57 }
 0x5cd   : > { %1043 = vst.msk [vmem:[%s422_s23 + $0x8] sm:$0xff] %vm431_vm0, %v1041_v58 }
 0x5ce   : > { %1551 = shalt.err (!%p1548_p0)
}
 0x5cf   : > { %s1641_s19 = smov 128  }
 0x5d0   : > { %1262 = dma.vmem_to_hbm [thread:$0]  (%p1766_p7), %s1060_s25, 256, %s1062_s26, %s1045_s30, %s1641_s19, %s1641_s19, %s1638_s18  }
 0x5d1 PF: > { %s2026_s11 = sld [smem:[#allocation17_spill]]  ;;  %p1279_p3 = pnand %p1199_p11, %p1732_p6 }
 0x5d3   : > { %p1280_p5 = pneg %p1279_p3 }
 0x5d7   : > { %s1076_s15 = sand.u32 1, %s2026_s11  }
 0x5d8   : > { %s1077_s21 = scalar_lea.sflag [#allocation5], %s1076_s15 }
 0x5d9   : > { %1593 = dma.done.wait (%p1280_p5), %s1077_s21, 256  }
 0x5da   : > { %1595 = vsyncadd (%p1280_p5), %s1077_s21, 4294967040  ;;  %s28_s10 = sadd.s32 1, %s1618_s10   ;;  %s2028_s22 = sld [smem:[#allocation18_spill]] }
 0x5db   : > { %p25_p9 = scmp.ge.s32.totalorder %s28_s10, 4   ;;  %s2029_s29 = sld [smem:[#allocation22_spill]] }
 0x5dc   : > { %s2030_s30 = sld [smem:[#allocation19_spill]]  ;;  %s2032_s27 = smov %s1602_s28 }
 0x5dd   : > { %s2031_s9 = sld [smem:[#allocation21_spill]]  ;;  %27 = sbr.rel (!%p25_p9) target bundleno = 12 (0xc), region = 118 }
 0x5e0   : > { %s2033_s28 = smov %s2028_s22 }
 0x5e2   :  { %1083 = vsyncpa [#allocation4], 1 }
 0x5e3   :  { %1085 = vsyncpa [#allocation4 + $0x1], 1 }
 0x5e4   :  { %1086 = vsyncpa [#allocation7], 1 }
 0x5e5   :  { %1088 = vsyncpa [#allocation7 + $0x1], 1 }
 0x5e6   :  { %1089 = vsyncpa [#allocation10], 1 }
 0x5e7   :  { %1090 = vsyncpa [#allocation5], 1 }
 0x5e8   :  { %1092 = vsyncpa [#allocation5 + $0x1], 1 }

</bundles_post_ra>
